<compile_context>
chip_gen: v5e
topology: v5e:2x2
jax: 0.10.0
libtpu: 0.0.40
codegen_flags: <defaults>
</compile_context>

<pallas_src>
import math
import functools

import numpy as np
import jax
import jax.numpy as jnp
from jax.experimental import pallas as pl
from jax.experimental.pallas import tpu as pltpu


# ----------------------------- in-kernel math helpers -----------------------------

def _erf(x):
    # Abramowitz & Stegun 7.1.26, |err| <= 1.5e-7.  Exact f32 divide (no approx recip).
    a1, a2, a3, a4, a5 = 0.254829592, -0.284496736, 1.421413741, -1.453152027, 1.061405429
    p = 0.3275911
    ax = jnp.abs(x)
    t = 1.0 / (1.0 + p * ax)
    poly = ((((a5 * t + a4) * t + a3) * t + a2) * t + a1) * t
    y = 1.0 - poly * jnp.exp(-ax * ax)
    return jnp.where(x >= 0.0, y, -y)


def _gelu(x):
    # exact (erf-based) GELU, same as torch.nn.GELU() default
    return 0.5 * x * (1.0 + _erf(x * 0.7071067811865476))


# ----------------------------------- the kernel ------------------------------------

def make_kernel(num_blocks, dims):
    TD = dims["time_dim"]
    CE = dims["cond_emb"]
    CIN = dims["cond_in"]
    LD = dims["latent_dim"]
    C = dims["channels"]
    TD4, CE4, C4 = 4 * TD, 4 * CE, 4 * C
    K1 = TD + CIN + LD                # stage-1 (block-diagonal) contraction dim
    N1 = TD4 + CE4 + C                # stage-1 output width: [te_h | ce_h | x0]
    K2 = TD4 + CE4                    # stage-2 contraction dim ([te_h | ce_h])
    OW0 = ((K1 + 1 + 7) // 8) * 8     # row where out_w starts inside the `pro` slab

    def kernel(acts_ref, pro_ref, tcw_ref, fc1_ref, fc2_ref, o_ref):
        dot = lambda a, b: jnp.dot(a, b, preferred_element_type=jnp.float32)

        acts = acts_ref[...]                                            # (B, K1)

        # --- prologue stage 1: blockdiag(te_w1, ce_w1, in_w) + GELU ---
        # output lanes: [0:TD4)=te hidden, [TD4:K2)=ce hidden, [K2:N1)=x after network[1]
        h1 = _gelu(dot(acts, pro_ref[0:K1, :]) + pro_ref[K1:K1 + 1, :])  # (B, N1)

        # --- stage 2 (te_w2 / ce_w2) pre-composed with every block's time/cond proj ---
        vec = tcw_ref[K2:K2 + 8, :]          # (8, nb*4C): [fused bias, ln_g, ln_b, fc2_b, 0..]
        tc_all = dot(h1[:, 0:K2], tcw_ref[0:K2, :]) + vec[0:1, :]        # (B, nb*4C)

        x = h1[:, K2:N1]                                                  # (B, C)

        # --- ResMLP blocks: in-loop matmul is only K=C wide; tc part is pre-computed ---
        for i in range(num_blocks):
            lo = i * C4
            residual = x
            h = dot(x, fc1_ref[i]) + tc_all[:, lo:lo + C4]               # (B, 4C)
            # LayerNorm (two-pass stats, f32)
            mu = jnp.mean(h, axis=-1, keepdims=True)
            d = h - mu
            var = jnp.mean(d * d, axis=-1, keepdims=True)
            h = d * jax.lax.rsqrt(var + 1e-5)
            h = h * vec[1:2, lo:lo + C4] + vec[2:3, lo:lo + C4]
            h = _gelu(h)
            h = dot(h, fc2_ref[i]) + vec[3:4, lo:lo + C]
            x = h + residual

        # --- final Linear ---
        o_ref[...] = (dot(x, pro_ref[OW0:OW0 + C, 0:LD])
                      + pro_ref[OW0 + C:OW0 + C + 1, 0:LD])

    return kernel


# ------------------------------- parameter packing ---------------------------------

def pack_params(p, dims, num_blocks):
    TD = dims["time_dim"]
    CE = dims["cond_emb"]
    CIN = dims["cond_in"]
    LD = dims["latent_dim"]
    C = dims["channels"]
    TD4, CE4, C4 = 4 * TD, 4 * CE, 4 * C
    K1 = TD + CIN + LD
    N1 = TD4 + CE4 + C
    K2 = TD4 + CE4
    NTC = num_blocks * C4
    hi = jax.lax.Precision.HIGHEST

    # --- `pro` slab (width N1): stage-1 block-diagonal weight+bias and the output head ---
    OW0 = ((K1 + 1 + 7) // 8) * 8
    rows = ((OW0 + C + 1 + 7) // 8) * 8
    pro = jnp.zeros((rows, N1), jnp.float32)
    pro = pro.at[0:TD, 0:TD4].set(p["te_w1"])
    pro = pro.at[TD:TD + CIN, TD4:TD4 + CE4].set(p["ce_w1"])
    pro = pro.at[TD + CIN:K1, TD4 + CE4:N1].set(p["in_w"])
    pro = pro.at[K1:K1 + 1, :].set(
        jnp.concatenate([p["te_b1"], p["ce_b1"], p["in_b"]], axis=1))
    pro = pro.at[OW0:OW0 + C, 0:LD].set(p["out_w"])
    pro = pro.at[OW0 + C:OW0 + C + 1, 0:LD].set(p["out_b"])

    # --- `tcw` slab: blockdiag(te_w2, ce_w2) composed with all blocks' time/cond proj ---
    w2bd = jnp.zeros((K2, TD4 + CE), jnp.float32)
    w2bd = w2bd.at[0:TD4, 0:TD4].set(p["te_w2"])
    w2bd = w2bd.at[TD4:K2, TD4:TD4 + CE].set(p["ce_w2"])
    b2 = jnp.concatenate([p["te_b2"], p["ce_b2"]], axis=1)               # (1, TD4+CE)

    wtc = jnp.concatenate(
        [jnp.concatenate([p["blk_tp_w"][i], p["blk_cp_w"][i]], axis=0)    # (TD4+CE, C4)
         for i in range(num_blocks)], axis=1)                             # (TD4+CE, NTC)
    btc = jnp.concatenate(
        [p["blk_fc1_b"][i] + p["blk_tp_b"][i] + p["blk_cp_b"][i]
         for i in range(num_blocks)], axis=1)                             # (1, NTC)

    wtc_fused = jnp.dot(w2bd, wtc, precision=hi)                          # (K2, NTC)
    b_fused = jnp.dot(b2, wtc, precision=hi) + btc                        # (1, NTC)

    ln_g = jnp.concatenate(list(p["blk_ln_g"]), axis=1)                   # (1, NTC)
    ln_b = jnp.concatenate(list(p["blk_ln_b"]), axis=1)                   # (1, NTC)
    fc2_b = jnp.concatenate(
        [jnp.pad(p["blk_fc2_b"][i], ((0, 0), (0, C4 - C)))
         for i in range(num_blocks)], axis=1)                             # (1, NTC)

    vec = jnp.concatenate([b_fused, ln_g, ln_b, fc2_b,
                           jnp.zeros((4, NTC), jnp.float32)], axis=0)     # (8, NTC)
    tcw = jnp.concatenate([wtc_fused, vec], axis=0)                       # (K2+8, NTC)

    packed = {
        "div_term": p["div_term"],
        "pro": pro,                      # (OW0+C+1 -> 8-padded, N1)
        "tcw": tcw,                      # (K2+8, nb*4C)
        "blk_fc1": p["blk_fc1_w"],       # (nb, C, 4C)
        "blk_fc2": p["blk_fc2_w"],       # (nb, 4C, C)
    }
    return packed


# ----------------------------------- wrapper ---------------------------------------

def conditional_denoising_forward(packed, z_t, t, y, *, dims, num_blocks):
    B = z_t.shape[0]
    LD = dims["latent_dim"]
    B_pad = max(8, ((B + 7) // 8) * 8)   # sublane-dense M for every matmul

    # parameter-free sinusoidal timestep features (fused into the same jit executable)
    # TODO(synk): trig stays outside the Pallas kernel (Mosaic trig lowering not relied on).
    tf = t.astype(jnp.float32)[:, None]
    arg = tf * packed["div_term"][None, :]
    emb = jnp.concatenate([jnp.sin(arg), jnp.cos(arg)], axis=-1)          # (B, TD)

    # order must match the block-diagonal stage-1 weight: [emb | y | z]
    acts = jnp.concatenate(
        [emb, y.astype(jnp.float32), z_t.astype(jnp.float32)], axis=-1)   # (B, TD+CIN+LD)
    acts = jnp.pad(acts, ((0, B_pad - B), (0, 0)))

    vmem = pl.BlockSpec(memory_space=pltpu.MemorySpace.VMEM)
    out = pl.pallas_call(
        make_kernel(num_blocks, dims),
        out_shape=jax.ShapeDtypeStruct((B_pad, LD), jnp.float32),
        in_specs=[vmem] * 5,
        out_specs=vmem,
        # actual footprint ~1.3 MiB f32; 8 MiB leaves headroom on every gen incl. v7x.
        compiler_params=pltpu.CompilerParams(vmem_limit_bytes=8 << 20),
    )(acts, packed["pro"], packed["tcw"], packed["blk_fc1"], packed["blk_fc2"])
    return out[:B]


# ----------------------------- deterministic parameter init -------------------------

def init_params(key, latent_dim, cond_in, time_dim, cond_emb_dim, channels, num_blocks):
    keys = iter(jax.random.split(key, 64))

    def linear(fin, fout):
        w = jax.random.normal(next(keys), (fin, fout), jnp.float32) * (1.0 / np.sqrt(fin))
        b = jax.random.normal(next(keys), (1, fout), jnp.float32) * 0.02
        return w, b

    p = {}
    p["div_term"] = jnp.exp(
        jnp.arange(0.0, time_dim, 2.0, dtype=jnp.float32) * (-(math.log(10000.0) / time_dim))
    )
    p["te_w1"], p["te_b1"] = linear(time_dim, time_dim * 4)
    p["te_w2"], p["te_b2"] = linear(time_dim * 4, time_dim * 4)
    p["ce_w1"], p["ce_b1"] = linear(cond_in, cond_emb_dim * 4)
    p["ce_w2"], p["ce_b2"] = linear(cond_emb_dim * 4, cond_emb_dim)
    p["in_w"], p["in_b"] = linear(latent_dim, channels)
    p["out_w"], p["out_b"] = linear(channels, latent_dim)

    fc1w, fc1b, lng, lnb, fc2w, fc2b, tpw, tpb, cpw, cpb = ([] for _ in range(10))
    for _ in range(num_blocks):
        w, b = linear(channels, 4 * channels); fc1w.append(w); fc1b.append(b)
        lng.append(jnp.ones((1, 4 * channels), jnp.float32))
        lnb.append(jnp.zeros((1, 4 * channels), jnp.float32))
        w, b = linear(4 * channels, channels); fc2w.append(w); fc2b.append(b)
        w, b = linear(time_dim * 4, 4 * channels); tpw.append(w); tpb.append(b)
        w, b = linear(cond_emb_dim, 4 * channels); cpw.append(w); cpb.append(b)

    p["blk_fc1_w"] = jnp.stack(fc1w); p["blk_fc1_b"] = jnp.stack(fc1b)
    p["blk_ln_g"] = jnp.stack(lng);   p["blk_ln_b"] = jnp.stack(lnb)
    p["blk_fc2_w"] = jnp.stack(fc2w); p["blk_fc2_b"] = jnp.stack(fc2b)
    p["blk_tp_w"] = jnp.stack(tpw);   p["blk_tp_b"] = jnp.stack(tpb)
    p["blk_cp_w"] = jnp.stack(cpw);   p["blk_cp_b"] = jnp.stack(cpb)
    return p


# ------------------------------- plain-JAX reference --------------------------------

def reference_forward(params, z_t, t, y, *, num_blocks):
    gelu = lambda v: jax.nn.gelu(v, approximate=False)
    dot = lambda a, b: jnp.dot(a, b, precision=jax.lax.Precision.HIGHEST)

    tf = t.astype(jnp.float32)[:, None]
    arg = tf * params["div_term"][None, :]
    emb = jnp.concatenate([jnp.sin(arg), jnp.cos(arg)], axis=-1)

    h = gelu(dot(emb, params["te_w1"]) + params["te_b1"])
    time_emb = dot(h, params["te_w2"]) + params["te_b2"]
    c = gelu(dot(y, params["ce_w1"]) + params["ce_b1"])
    cond_emb = dot(c, params["ce_w2"]) + params["ce_b2"]

    x = gelu(dot(z_t, params["in_w"]) + params["in_b"])
    for i in range(num_blocks):
        residual = x
        h = dot(x, params["blk_fc1_w"][i]) + params["blk_fc1_b"][i]
        h = h + dot(time_emb, params["blk_tp_w"][i]) + params["blk_tp_b"][i]
        h = h + dot(cond_emb, params["blk_cp_w"][i]) + params["blk_cp_b"][i]
        mu = jnp.mean(h, axis=-1, keepdims=True)
        var = jnp.mean(jnp.square(h - mu), axis=-1, keepdims=True)
        h = (h - mu) / jnp.sqrt(var + 1e-5) * params["blk_ln_g"][i] + params["blk_ln_b"][i]
        h = gelu(h)
        h = dot(h, params["blk_fc2_w"][i]) + params["blk_fc2_b"][i]
        x = h + residual
    return dot(x, params["out_w"]) + params["out_b"]


# ------------------------------------- main ------------------------------------------

if __name__ == "__main__":
    B = 4
    LATENT_DIM = 16
    COND_IN_DIM = 8
    TIME_EMB_DIM = 32
    COND_EMB_DIM = 32
    MODEL_CHANNELS = 64
    NUM_BLOCKS = 3

    key = jax.random.PRNGKey(0)
    kp, kz, kt, ky = jax.random.split(key, 4)

    params = init_params(kp, LATENT_DIM, COND_IN_DIM, TIME_EMB_DIM,
                         COND_EMB_DIM, MODEL_CHANNELS, NUM_BLOCKS)
    dims = dict(latent_dim=LATENT_DIM, cond_in=COND_IN_DIM, time_dim=TIME_EMB_DIM,
                cond_emb=COND_EMB_DIM, channels=MODEL_CHANNELS)
    packed = pack_params(params, dims, NUM_BLOCKS)

    z_t = jax.random.normal(kz, (B, LATENT_DIM), jnp.float32)
    t = jax.random.randint(kt, (B,), 0, 1000)                 # integer timesteps
    y = jax.random.normal(ky, (B, COND_IN_DIM), jnp.float32)

    fwd = jax.jit(functools.partial(conditional_denoising_forward,
                                    dims=dims, num_blocks=NUM_BLOCKS))
    out = jax.block_until_ready(fwd(packed, z_t, t, y))

    ref = reference_forward(params, z_t, t, y, num_blocks=NUM_BLOCKS)
    assert out.shape == (B, LATENT_DIM)
    assert bool(jnp.all(jnp.isfinite(out)))
    max_err = float(jnp.max(jnp.abs(out - ref)))
    if max_err < 5e-3:
        print("KERNEL_OK")
    else:
        raise SystemExit(f"mismatch vs reference: max_abs_err={max_err}")
</pallas_src>

<mosaic_0001>
module attributes {stable_mosaic.version = 11 : i64} {
  func.func @kernel(%arg0: memref<8x56xf32, #tpu.memory_space<vmem>>, %arg1: memref<136x320xf32, #tpu.memory_space<vmem>>, %arg2: memref<264x768xf32, #tpu.memory_space<vmem>>, %arg3: memref<3x64x256xf32, #tpu.memory_space<vmem>>, %arg4: memref<3x256x64xf32, #tpu.memory_space<vmem>>, %arg5: memref<8x16xf32, #tpu.memory_space<vmem>>) attributes {dimension_semantics = [], scalar_prefetch = 0 : i64, scratch_operands = 0 : i64, tpu.core_type = #tpu.core_type<tc>} {
    %c0 = arith.constant 0 : index
    %c0_0 = arith.constant 0 : index
    %0 = vector.load %arg0[%c0, %c0_0] : memref<8x56xf32, #tpu.memory_space<vmem>>, vector<8x56xf32>
    %c0_1 = arith.constant 0 : index
    %c0_2 = arith.constant 0 : index
    %1 = vector.load %arg1[%c0_1, %c0_2] : memref<136x320xf32, #tpu.memory_space<vmem>>, vector<56x320xf32>
    %cst = arith.constant dense<0.000000e+00> : vector<8x320xf32>
    %2 = tpu.matmul %0, %1, %cst {dimension_numbers = #tpu.dot_dimension_numbers<[1], [0], [0], [1], [0, 0, 1, 1], [], []>} : vector<8x56xf32>, vector<56x320xf32>, vector<8x320xf32> -> vector<8x320xf32>
    %c56 = arith.constant 56 : index
    %c0_3 = arith.constant 0 : index
    %3 = vector.load %arg1[%c56, %c0_3] : memref<136x320xf32, #tpu.memory_space<vmem>>, vector<1x320xf32>
    %4 = vector.broadcast %3 : vector<1x320xf32> to vector<8x320xf32>
    %5 = arith.addf %2, %4 : vector<8x320xf32>
    %cst_4 = arith.constant 5.000000e-01 : f32
    %6 = vector.broadcast %cst_4 : f32 to vector<8x320xf32>
    %7 = arith.mulf %6, %5 : vector<8x320xf32>
    %cst_5 = arith.constant 0.707106769 : f32
    %8 = vector.broadcast %cst_5 : f32 to vector<8x320xf32>
    %9 = arith.mulf %5, %8 : vector<8x320xf32>
    %10 = math.absf %9 : vector<8x320xf32>
    %cst_6 = arith.constant 0.327591091 : f32
    %11 = vector.broadcast %cst_6 : f32 to vector<8x320xf32>
    %12 = arith.mulf %11, %10 : vector<8x320xf32>
    %cst_7 = arith.constant 1.000000e+00 : f32
    %13 = vector.broadcast %cst_7 : f32 to vector<8x320xf32>
    %14 = arith.addf %13, %12 : vector<8x320xf32>
    %cst_8 = arith.constant 1.000000e+00 : f32
    %15 = vector.broadcast %cst_8 : f32 to vector<8x320xf32>
    %16 = arith.divf %15, %14 : vector<8x320xf32>
    %cst_9 = arith.constant 1.06140542 : f32
    %17 = vector.broadcast %cst_9 : f32 to vector<8x320xf32>
    %18 = arith.mulf %17, %16 : vector<8x320xf32>
    %cst_10 = arith.constant -1.45315206 : f32
    %19 = vector.broadcast %cst_10 : f32 to vector<8x320xf32>
    %20 = arith.addf %18, %19 : vector<8x320xf32>
    %21 = arith.mulf %20, %16 : vector<8x320xf32>
    %cst_11 = arith.constant 1.42141378 : f32
    %22 = vector.broadcast %cst_11 : f32 to vector<8x320xf32>
    %23 = arith.addf %21, %22 : vector<8x320xf32>
    %24 = arith.mulf %23, %16 : vector<8x320xf32>
    %cst_12 = arith.constant -0.284496725 : f32
    %25 = vector.broadcast %cst_12 : f32 to vector<8x320xf32>
    %26 = arith.addf %24, %25 : vector<8x320xf32>
    %27 = arith.mulf %26, %16 : vector<8x320xf32>
    %cst_13 = arith.constant 0.254829586 : f32
    %28 = vector.broadcast %cst_13 : f32 to vector<8x320xf32>
    %29 = arith.addf %27, %28 : vector<8x320xf32>
    %30 = arith.mulf %29, %16 : vector<8x320xf32>
    %cst_14 = arith.constant 0.000000e+00 : f32
    %31 = vector.broadcast %cst_14 : f32 to vector<8x320xf32>
    %32 = arith.subf %31, %10 : vector<8x320xf32>
    %33 = arith.mulf %32, %10 : vector<8x320xf32>
    %34 = math.exp %33 : vector<8x320xf32>
    %35 = arith.mulf %30, %34 : vector<8x320xf32>
    %cst_15 = arith.constant 1.000000e+00 : f32
    %36 = vector.broadcast %cst_15 : f32 to vector<8x320xf32>
    %37 = arith.subf %36, %35 : vector<8x320xf32>
    %cst_16 = arith.constant 0.000000e+00 : f32
    %38 = vector.broadcast %cst_16 : f32 to vector<8x320xf32>
    %39 = arith.cmpf oge, %9, %38 : vector<8x320xf32>
    %cst_17 = arith.constant 0.000000e+00 : f32
    %40 = vector.broadcast %cst_17 : f32 to vector<8x320xf32>
    %41 = arith.subf %40, %37 : vector<8x320xf32>
    %42 = arith.select %39, %37, %41 : vector<8x320xi1>, vector<8x320xf32>
    %cst_18 = arith.constant 1.000000e+00 : f32
    %43 = vector.broadcast %cst_18 : f32 to vector<8x320xf32>
    %44 = arith.addf %43, %42 : vector<8x320xf32>
    %45 = arith.mulf %7, %44 : vector<8x320xf32>
    %c256 = arith.constant 256 : index
    %c0_19 = arith.constant 0 : index
    %46 = vector.load %arg2[%c256, %c0_19] : memref<264x768xf32, #tpu.memory_space<vmem>>, vector<8x768xf32>
    %47 = vector.extract_strided_slice %45 {offsets = [0, 0], sizes = [8, 256], strides = [1, 1]} : vector<8x320xf32> to vector<8x256xf32>
    %c0_20 = arith.constant 0 : index
    %c0_21 = arith.constant 0 : index
    %48 = vector.load %arg2[%c0_20, %c0_21] : memref<264x768xf32, #tpu.memory_space<vmem>>, vector<256x768xf32>
    %cst_22 = arith.constant dense<0.000000e+00> : vector<8x768xf32>
    %49 = tpu.matmul %47, %48, %cst_22 {dimension_numbers = #tpu.dot_dimension_numbers<[1], [0], [0], [1], [0, 0, 1, 1], [], []>} : vector<8x256xf32>, vector<256x768xf32>, vector<8x768xf32> -> vector<8x768xf32>
    %50 = vector.extract_strided_slice %46 {offsets = [0, 0], sizes = [1, 768], strides = [1, 1]} : vector<8x768xf32> to vector<1x768xf32>
    %51 = vector.broadcast %50 : vector<1x768xf32> to vector<8x768xf32>
    %52 = arith.addf %49, %51 : vector<8x768xf32>
    %53 = vector.extract_strided_slice %45 {offsets = [0, 256], sizes = [8, 64], strides = [1, 1]} : vector<8x320xf32> to vector<8x64xf32>
    %c0_23 = arith.constant 0 : index
    %c0_24 = arith.constant 0 : index
    %c0_25 = arith.constant 0 : index
    %54 = vector.load %arg3[%c0_23, %c0_24, %c0_25] : memref<3x64x256xf32, #tpu.memory_space<vmem>>, vector<1x64x256xf32>
    %55 = vector.shape_cast %54 : vector<1x64x256xf32> to vector<64x256xf32>
    %cst_26 = arith.constant dense<0.000000e+00> : vector<8x256xf32>
    %56 = tpu.matmul %53, %55, %cst_26 {dimension_numbers = #tpu.dot_dimension_numbers<[1], [0], [0], [1], [0, 0, 1, 1], [], []>} : vector<8x64xf32>, vector<64x256xf32>, vector<8x256xf32> -> vector<8x256xf32>
    %57 = vector.extract_strided_slice %52 {offsets = [0, 0], sizes = [8, 256], strides = [1, 1]} : vector<8x768xf32> to vector<8x256xf32>
    %58 = arith.addf %56, %57 : vector<8x256xf32>
    %cst_27 = arith.constant dense<0.000000e+00> : vector<8xf32>
    %59 = vector.multi_reduction <add>, %58, %cst_27 [1] : vector<8x256xf32> to vector<8xf32>
    %60 = vector.shape_cast %59 : vector<8xf32> to vector<8x1xf32>
    %cst_28 = arith.constant 2.560000e+02 : f32
    %61 = vector.broadcast %cst_28 : f32 to vector<8x1xf32>
    %62 = arith.divf %60, %61 : vector<8x1xf32>
    %63 = vector.broadcast %62 : vector<8x1xf32> to vector<8x256xf32>
    %64 = arith.subf %58, %63 : vector<8x256xf32>
    %65 = arith.mulf %64, %64 : vector<8x256xf32>
    %cst_29 = arith.constant dense<0.000000e+00> : vector<8xf32>
    %66 = vector.multi_reduction <add>, %65, %cst_29 [1] : vector<8x256xf32> to vector<8xf32>
    %67 = vector.shape_cast %66 : vector<8xf32> to vector<8x1xf32>
    %cst_30 = arith.constant 2.560000e+02 : f32
    %68 = vector.broadcast %cst_30 : f32 to vector<8x1xf32>
    %69 = arith.divf %67, %68 : vector<8x1xf32>
    %cst_31 = arith.constant 9.99999974E-6 : f32
    %70 = vector.broadcast %cst_31 : f32 to vector<8x1xf32>
    %71 = arith.addf %69, %70 : vector<8x1xf32>
    %72 = math.rsqrt %71 : vector<8x1xf32>
    %73 = vector.broadcast %72 : vector<8x1xf32> to vector<8x256xf32>
    %74 = arith.mulf %64, %73 : vector<8x256xf32>
    %75 = vector.extract_strided_slice %46 {offsets = [1, 0], sizes = [1, 256], strides = [1, 1]} : vector<8x768xf32> to vector<1x256xf32>
    %76 = vector.broadcast %75 : vector<1x256xf32> to vector<8x256xf32>
    %77 = arith.mulf %74, %76 : vector<8x256xf32>
    %78 = vector.extract_strided_slice %46 {offsets = [2, 0], sizes = [1, 256], strides = [1, 1]} : vector<8x768xf32> to vector<1x256xf32>
    %79 = vector.broadcast %78 : vector<1x256xf32> to vector<8x256xf32>
    %80 = arith.addf %77, %79 : vector<8x256xf32>
    %cst_32 = arith.constant 5.000000e-01 : f32
    %81 = vector.broadcast %cst_32 : f32 to vector<8x256xf32>
    %82 = arith.mulf %81, %80 : vector<8x256xf32>
    %cst_33 = arith.constant 0.707106769 : f32
    %83 = vector.broadcast %cst_33 : f32 to vector<8x256xf32>
    %84 = arith.mulf %80, %83 : vector<8x256xf32>
    %85 = math.absf %84 : vector<8x256xf32>
    %cst_34 = arith.constant 0.327591091 : f32
    %86 = vector.broadcast %cst_34 : f32 to vector<8x256xf32>
    %87 = arith.mulf %86, %85 : vector<8x256xf32>
    %cst_35 = arith.constant 1.000000e+00 : f32
    %88 = vector.broadcast %cst_35 : f32 to vector<8x256xf32>
    %89 = arith.addf %88, %87 : vector<8x256xf32>
    %cst_36 = arith.constant 1.000000e+00 : f32
    %90 = vector.broadcast %cst_36 : f32 to vector<8x256xf32>
    %91 = arith.divf %90, %89 : vector<8x256xf32>
    %cst_37 = arith.constant 1.06140542 : f32
    %92 = vector.broadcast %cst_37 : f32 to vector<8x256xf32>
    %93 = arith.mulf %92, %91 : vector<8x256xf32>
    %cst_38 = arith.constant -1.45315206 : f32
    %94 = vector.broadcast %cst_38 : f32 to vector<8x256xf32>
    %95 = arith.addf %93, %94 : vector<8x256xf32>
    %96 = arith.mulf %95, %91 : vector<8x256xf32>
    %cst_39 = arith.constant 1.42141378 : f32
    %97 = vector.broadcast %cst_39 : f32 to vector<8x256xf32>
    %98 = arith.addf %96, %97 : vector<8x256xf32>
    %99 = arith.mulf %98, %91 : vector<8x256xf32>
    %cst_40 = arith.constant -0.284496725 : f32
    %100 = vector.broadcast %cst_40 : f32 to vector<8x256xf32>
    %101 = arith.addf %99, %100 : vector<8x256xf32>
    %102 = arith.mulf %101, %91 : vector<8x256xf32>
    %cst_41 = arith.constant 0.254829586 : f32
    %103 = vector.broadcast %cst_41 : f32 to vector<8x256xf32>
    %104 = arith.addf %102, %103 : vector<8x256xf32>
    %105 = arith.mulf %104, %91 : vector<8x256xf32>
    %cst_42 = arith.constant 0.000000e+00 : f32
    %106 = vector.broadcast %cst_42 : f32 to vector<8x256xf32>
    %107 = arith.subf %106, %85 : vector<8x256xf32>
    %108 = arith.mulf %107, %85 : vector<8x256xf32>
    %109 = math.exp %108 : vector<8x256xf32>
    %110 = arith.mulf %105, %109 : vector<8x256xf32>
    %cst_43 = arith.constant 1.000000e+00 : f32
    %111 = vector.broadcast %cst_43 : f32 to vector<8x256xf32>
    %112 = arith.subf %111, %110 : vector<8x256xf32>
    %cst_44 = arith.constant 0.000000e+00 : f32
    %113 = vector.broadcast %cst_44 : f32 to vector<8x256xf32>
    %114 = arith.cmpf oge, %84, %113 : vector<8x256xf32>
    %cst_45 = arith.constant 0.000000e+00 : f32
    %115 = vector.broadcast %cst_45 : f32 to vector<8x256xf32>
    %116 = arith.subf %115, %112 : vector<8x256xf32>
    %117 = arith.select %114, %112, %116 : vector<8x256xi1>, vector<8x256xf32>
    %cst_46 = arith.constant 1.000000e+00 : f32
    %118 = vector.broadcast %cst_46 : f32 to vector<8x256xf32>
    %119 = arith.addf %118, %117 : vector<8x256xf32>
    %120 = arith.mulf %82, %119 : vector<8x256xf32>
    %c0_47 = arith.constant 0 : index
    %c0_48 = arith.constant 0 : index
    %c0_49 = arith.constant 0 : index
    %121 = vector.load %arg4[%c0_47, %c0_48, %c0_49] : memref<3x256x64xf32, #tpu.memory_space<vmem>>, vector<1x256x64xf32>
    %122 = vector.shape_cast %121 : vector<1x256x64xf32> to vector<256x64xf32>
    %cst_50 = arith.constant dense<0.000000e+00> : vector<8x64xf32>
    %123 = tpu.matmul %120, %122, %cst_50 {dimension_numbers = #tpu.dot_dimension_numbers<[1], [0], [0], [1], [0, 0, 1, 1], [], []>} : vector<8x256xf32>, vector<256x64xf32>, vector<8x64xf32> -> vector<8x64xf32>
    %124 = vector.extract_strided_slice %46 {offsets = [3, 0], sizes = [1, 64], strides = [1, 1]} : vector<8x768xf32> to vector<1x64xf32>
    %125 = vector.broadcast %124 : vector<1x64xf32> to vector<8x64xf32>
    %126 = arith.addf %123, %125 : vector<8x64xf32>
    %127 = arith.addf %126, %53 : vector<8x64xf32>
    %c1 = arith.constant 1 : index
    %c0_51 = arith.constant 0 : index
    %c0_52 = arith.constant 0 : index
    %128 = vector.load %arg3[%c1, %c0_51, %c0_52] : memref<3x64x256xf32, #tpu.memory_space<vmem>>, vector<1x64x256xf32>
    %129 = vector.shape_cast %128 : vector<1x64x256xf32> to vector<64x256xf32>
    %cst_53 = arith.constant dense<0.000000e+00> : vector<8x256xf32>
    %130 = tpu.matmul %127, %129, %cst_53 {dimension_numbers = #tpu.dot_dimension_numbers<[1], [0], [0], [1], [0, 0, 1, 1], [], []>} : vector<8x64xf32>, vector<64x256xf32>, vector<8x256xf32> -> vector<8x256xf32>
    %131 = vector.extract_strided_slice %52 {offsets = [0, 256], sizes = [8, 256], strides = [1, 1]} : vector<8x768xf32> to vector<8x256xf32>
    %132 = arith.addf %130, %131 : vector<8x256xf32>
    %cst_54 = arith.constant dense<0.000000e+00> : vector<8xf32>
    %133 = vector.multi_reduction <add>, %132, %cst_54 [1] : vector<8x256xf32> to vector<8xf32>
    %134 = vector.shape_cast %133 : vector<8xf32> to vector<8x1xf32>
    %cst_55 = arith.constant 2.560000e+02 : f32
    %135 = vector.broadcast %cst_55 : f32 to vector<8x1xf32>
    %136 = arith.divf %134, %135 : vector<8x1xf32>
    %137 = vector.broadcast %136 : vector<8x1xf32> to vector<8x256xf32>
    %138 = arith.subf %132, %137 : vector<8x256xf32>
    %139 = arith.mulf %138, %138 : vector<8x256xf32>
    %cst_56 = arith.constant dense<0.000000e+00> : vector<8xf32>
    %140 = vector.multi_reduction <add>, %139, %cst_56 [1] : vector<8x256xf32> to vector<8xf32>
    %141 = vector.shape_cast %140 : vector<8xf32> to vector<8x1xf32>
    %cst_57 = arith.constant 2.560000e+02 : f32
    %142 = vector.broadcast %cst_57 : f32 to vector<8x1xf32>
    %143 = arith.divf %141, %142 : vector<8x1xf32>
    %cst_58 = arith.constant 9.99999974E-6 : f32
    %144 = vector.broadcast %cst_58 : f32 to vector<8x1xf32>
    %145 = arith.addf %143, %144 : vector<8x1xf32>
    %146 = math.rsqrt %145 : vector<8x1xf32>
    %147 = vector.broadcast %146 : vector<8x1xf32> to vector<8x256xf32>
    %148 = arith.mulf %138, %147 : vector<8x256xf32>
    %149 = vector.extract_strided_slice %46 {offsets = [1, 256], sizes = [1, 256], strides = [1, 1]} : vector<8x768xf32> to vector<1x256xf32>
    %150 = vector.broadcast %149 : vector<1x256xf32> to vector<8x256xf32>
    %151 = arith.mulf %148, %150 : vector<8x256xf32>
    %152 = vector.extract_strided_slice %46 {offsets = [2, 256], sizes = [1, 256], strides = [1, 1]} : vector<8x768xf32> to vector<1x256xf32>
    %153 = vector.broadcast %152 : vector<1x256xf32> to vector<8x256xf32>
    %154 = arith.addf %151, %153 : vector<8x256xf32>
    %cst_59 = arith.constant 5.000000e-01 : f32
    %155 = vector.broadcast %cst_59 : f32 to vector<8x256xf32>
    %156 = arith.mulf %155, %154 : vector<8x256xf32>
    %cst_60 = arith.constant 0.707106769 : f32
    %157 = vector.broadcast %cst_60 : f32 to vector<8x256xf32>
    %158 = arith.mulf %154, %157 : vector<8x256xf32>
    %159 = math.absf %158 : vector<8x256xf32>
    %cst_61 = arith.constant 0.327591091 : f32
    %160 = vector.broadcast %cst_61 : f32 to vector<8x256xf32>
    %161 = arith.mulf %160, %159 : vector<8x256xf32>
    %cst_62 = arith.constant 1.000000e+00 : f32
    %162 = vector.broadcast %cst_62 : f32 to vector<8x256xf32>
    %163 = arith.addf %162, %161 : vector<8x256xf32>
    %cst_63 = arith.constant 1.000000e+00 : f32
    %164 = vector.broadcast %cst_63 : f32 to vector<8x256xf32>
    %165 = arith.divf %164, %163 : vector<8x256xf32>
    %cst_64 = arith.constant 1.06140542 : f32
    %166 = vector.broadcast %cst_64 : f32 to vector<8x256xf32>
    %167 = arith.mulf %166, %165 : vector<8x256xf32>
    %cst_65 = arith.constant -1.45315206 : f32
    %168 = vector.broadcast %cst_65 : f32 to vector<8x256xf32>
    %169 = arith.addf %167, %168 : vector<8x256xf32>
    %170 = arith.mulf %169, %165 : vector<8x256xf32>
    %cst_66 = arith.constant 1.42141378 : f32
    %171 = vector.broadcast %cst_66 : f32 to vector<8x256xf32>
    %172 = arith.addf %170, %171 : vector<8x256xf32>
    %173 = arith.mulf %172, %165 : vector<8x256xf32>
    %cst_67 = arith.constant -0.284496725 : f32
    %174 = vector.broadcast %cst_67 : f32 to vector<8x256xf32>
    %175 = arith.addf %173, %174 : vector<8x256xf32>
    %176 = arith.mulf %175, %165 : vector<8x256xf32>
    %cst_68 = arith.constant 0.254829586 : f32
    %177 = vector.broadcast %cst_68 : f32 to vector<8x256xf32>
    %178 = arith.addf %176, %177 : vector<8x256xf32>
    %179 = arith.mulf %178, %165 : vector<8x256xf32>
    %cst_69 = arith.constant 0.000000e+00 : f32
    %180 = vector.broadcast %cst_69 : f32 to vector<8x256xf32>
    %181 = arith.subf %180, %159 : vector<8x256xf32>
    %182 = arith.mulf %181, %159 : vector<8x256xf32>
    %183 = math.exp %182 : vector<8x256xf32>
    %184 = arith.mulf %179, %183 : vector<8x256xf32>
    %cst_70 = arith.constant 1.000000e+00 : f32
    %185 = vector.broadcast %cst_70 : f32 to vector<8x256xf32>
    %186 = arith.subf %185, %184 : vector<8x256xf32>
    %cst_71 = arith.constant 0.000000e+00 : f32
    %187 = vector.broadcast %cst_71 : f32 to vector<8x256xf32>
    %188 = arith.cmpf oge, %158, %187 : vector<8x256xf32>
    %cst_72 = arith.constant 0.000000e+00 : f32
    %189 = vector.broadcast %cst_72 : f32 to vector<8x256xf32>
    %190 = arith.subf %189, %186 : vector<8x256xf32>
    %191 = arith.select %188, %186, %190 : vector<8x256xi1>, vector<8x256xf32>
    %cst_73 = arith.constant 1.000000e+00 : f32
    %192 = vector.broadcast %cst_73 : f32 to vector<8x256xf32>
    %193 = arith.addf %192, %191 : vector<8x256xf32>
    %194 = arith.mulf %156, %193 : vector<8x256xf32>
    %c1_74 = arith.constant 1 : index
    %c0_75 = arith.constant 0 : index
    %c0_76 = arith.constant 0 : index
    %195 = vector.load %arg4[%c1_74, %c0_75, %c0_76] : memref<3x256x64xf32, #tpu.memory_space<vmem>>, vector<1x256x64xf32>
    %196 = vector.shape_cast %195 : vector<1x256x64xf32> to vector<256x64xf32>
    %cst_77 = arith.constant dense<0.000000e+00> : vector<8x64xf32>
    %197 = tpu.matmul %194, %196, %cst_77 {dimension_numbers = #tpu.dot_dimension_numbers<[1], [0], [0], [1], [0, 0, 1, 1], [], []>} : vector<8x256xf32>, vector<256x64xf32>, vector<8x64xf32> -> vector<8x64xf32>
    %198 = vector.extract_strided_slice %46 {offsets = [3, 256], sizes = [1, 64], strides = [1, 1]} : vector<8x768xf32> to vector<1x64xf32>
    %199 = vector.broadcast %198 : vector<1x64xf32> to vector<8x64xf32>
    %200 = arith.addf %197, %199 : vector<8x64xf32>
    %201 = arith.addf %200, %127 : vector<8x64xf32>
    %c2 = arith.constant 2 : index
    %c0_78 = arith.constant 0 : index
    %c0_79 = arith.constant 0 : index
    %202 = vector.load %arg3[%c2, %c0_78, %c0_79] : memref<3x64x256xf32, #tpu.memory_space<vmem>>, vector<1x64x256xf32>
    %203 = vector.shape_cast %202 : vector<1x64x256xf32> to vector<64x256xf32>
    %cst_80 = arith.constant dense<0.000000e+00> : vector<8x256xf32>
    %204 = tpu.matmul %201, %203, %cst_80 {dimension_numbers = #tpu.dot_dimension_numbers<[1], [0], [0], [1], [0, 0, 1, 1], [], []>} : vector<8x64xf32>, vector<64x256xf32>, vector<8x256xf32> -> vector<8x256xf32>
    %205 = vector.extract_strided_slice %52 {offsets = [0, 512], sizes = [8, 256], strides = [1, 1]} : vector<8x768xf32> to vector<8x256xf32>
    %206 = arith.addf %204, %205 : vector<8x256xf32>
    %cst_81 = arith.constant dense<0.000000e+00> : vector<8xf32>
    %207 = vector.multi_reduction <add>, %206, %cst_81 [1] : vector<8x256xf32> to vector<8xf32>
    %208 = vector.shape_cast %207 : vector<8xf32> to vector<8x1xf32>
    %cst_82 = arith.constant 2.560000e+02 : f32
    %209 = vector.broadcast %cst_82 : f32 to vector<8x1xf32>
    %210 = arith.divf %208, %209 : vector<8x1xf32>
    %211 = vector.broadcast %210 : vector<8x1xf32> to vector<8x256xf32>
    %212 = arith.subf %206, %211 : vector<8x256xf32>
    %213 = arith.mulf %212, %212 : vector<8x256xf32>
    %cst_83 = arith.constant dense<0.000000e+00> : vector<8xf32>
    %214 = vector.multi_reduction <add>, %213, %cst_83 [1] : vector<8x256xf32> to vector<8xf32>
    %215 = vector.shape_cast %214 : vector<8xf32> to vector<8x1xf32>
    %cst_84 = arith.constant 2.560000e+02 : f32
    %216 = vector.broadcast %cst_84 : f32 to vector<8x1xf32>
    %217 = arith.divf %215, %216 : vector<8x1xf32>
    %cst_85 = arith.constant 9.99999974E-6 : f32
    %218 = vector.broadcast %cst_85 : f32 to vector<8x1xf32>
    %219 = arith.addf %217, %218 : vector<8x1xf32>
    %220 = math.rsqrt %219 : vector<8x1xf32>
    %221 = vector.broadcast %220 : vector<8x1xf32> to vector<8x256xf32>
    %222 = arith.mulf %212, %221 : vector<8x256xf32>
    %223 = vector.extract_strided_slice %46 {offsets = [1, 512], sizes = [1, 256], strides = [1, 1]} : vector<8x768xf32> to vector<1x256xf32>
    %224 = vector.broadcast %223 : vector<1x256xf32> to vector<8x256xf32>
    %225 = arith.mulf %222, %224 : vector<8x256xf32>
    %226 = vector.extract_strided_slice %46 {offsets = [2, 512], sizes = [1, 256], strides = [1, 1]} : vector<8x768xf32> to vector<1x256xf32>
    %227 = vector.broadcast %226 : vector<1x256xf32> to vector<8x256xf32>
    %228 = arith.addf %225, %227 : vector<8x256xf32>
    %cst_86 = arith.constant 5.000000e-01 : f32
    %229 = vector.broadcast %cst_86 : f32 to vector<8x256xf32>
    %230 = arith.mulf %229, %228 : vector<8x256xf32>
    %cst_87 = arith.constant 0.707106769 : f32
    %231 = vector.broadcast %cst_87 : f32 to vector<8x256xf32>
    %232 = arith.mulf %228, %231 : vector<8x256xf32>
    %233 = math.absf %232 : vector<8x256xf32>
    %cst_88 = arith.constant 0.327591091 : f32
    %234 = vector.broadcast %cst_88 : f32 to vector<8x256xf32>
    %235 = arith.mulf %234, %233 : vector<8x256xf32>
    %cst_89 = arith.constant 1.000000e+00 : f32
    %236 = vector.broadcast %cst_89 : f32 to vector<8x256xf32>
    %237 = arith.addf %236, %235 : vector<8x256xf32>
    %cst_90 = arith.constant 1.000000e+00 : f32
    %238 = vector.broadcast %cst_90 : f32 to vector<8x256xf32>
    %239 = arith.divf %238, %237 : vector<8x256xf32>
    %cst_91 = arith.constant 1.06140542 : f32
    %240 = vector.broadcast %cst_91 : f32 to vector<8x256xf32>
    %241 = arith.mulf %240, %239 : vector<8x256xf32>
    %cst_92 = arith.constant -1.45315206 : f32
    %242 = vector.broadcast %cst_92 : f32 to vector<8x256xf32>
    %243 = arith.addf %241, %242 : vector<8x256xf32>
    %244 = arith.mulf %243, %239 : vector<8x256xf32>
    %cst_93 = arith.constant 1.42141378 : f32
    %245 = vector.broadcast %cst_93 : f32 to vector<8x256xf32>
    %246 = arith.addf %244, %245 : vector<8x256xf32>
    %247 = arith.mulf %246, %239 : vector<8x256xf32>
    %cst_94 = arith.constant -0.284496725 : f32
    %248 = vector.broadcast %cst_94 : f32 to vector<8x256xf32>
    %249 = arith.addf %247, %248 : vector<8x256xf32>
    %250 = arith.mulf %249, %239 : vector<8x256xf32>
    %cst_95 = arith.constant 0.254829586 : f32
    %251 = vector.broadcast %cst_95 : f32 to vector<8x256xf32>
    %252 = arith.addf %250, %251 : vector<8x256xf32>
    %253 = arith.mulf %252, %239 : vector<8x256xf32>
    %cst_96 = arith.constant 0.000000e+00 : f32
    %254 = vector.broadcast %cst_96 : f32 to vector<8x256xf32>
    %255 = arith.subf %254, %233 : vector<8x256xf32>
    %256 = arith.mulf %255, %233 : vector<8x256xf32>
    %257 = math.exp %256 : vector<8x256xf32>
    %258 = arith.mulf %253, %257 : vector<8x256xf32>
    %cst_97 = arith.constant 1.000000e+00 : f32
    %259 = vector.broadcast %cst_97 : f32 to vector<8x256xf32>
    %260 = arith.subf %259, %258 : vector<8x256xf32>
    %cst_98 = arith.constant 0.000000e+00 : f32
    %261 = vector.broadcast %cst_98 : f32 to vector<8x256xf32>
    %262 = arith.cmpf oge, %232, %261 : vector<8x256xf32>
    %cst_99 = arith.constant 0.000000e+00 : f32
    %263 = vector.broadcast %cst_99 : f32 to vector<8x256xf32>
    %264 = arith.subf %263, %260 : vector<8x256xf32>
    %265 = arith.select %262, %260, %264 : vector<8x256xi1>, vector<8x256xf32>
    %cst_100 = arith.constant 1.000000e+00 : f32
    %266 = vector.broadcast %cst_100 : f32 to vector<8x256xf32>
    %267 = arith.addf %266, %265 : vector<8x256xf32>
    %268 = arith.mulf %230, %267 : vector<8x256xf32>
    %c2_101 = arith.constant 2 : index
    %c0_102 = arith.constant 0 : index
    %c0_103 = arith.constant 0 : index
    %269 = vector.load %arg4[%c2_101, %c0_102, %c0_103] : memref<3x256x64xf32, #tpu.memory_space<vmem>>, vector<1x256x64xf32>
    %270 = vector.shape_cast %269 : vector<1x256x64xf32> to vector<256x64xf32>
    %cst_104 = arith.constant dense<0.000000e+00> : vector<8x64xf32>
    %271 = tpu.matmul %268, %270, %cst_104 {dimension_numbers = #tpu.dot_dimension_numbers<[1], [0], [0], [1], [0, 0, 1, 1], [], []>} : vector<8x256xf32>, vector<256x64xf32>, vector<8x64xf32> -> vector<8x64xf32>
    %272 = vector.extract_strided_slice %46 {offsets = [3, 512], sizes = [1, 64], strides = [1, 1]} : vector<8x768xf32> to vector<1x64xf32>
    %273 = vector.broadcast %272 : vector<1x64xf32> to vector<8x64xf32>
    %274 = arith.addf %271, %273 : vector<8x64xf32>
    %275 = arith.addf %274, %201 : vector<8x64xf32>
    %c64 = arith.constant 64 : index
    %c0_105 = arith.constant 0 : index
    %276 = vector.load %arg1[%c64, %c0_105] : memref<136x320xf32, #tpu.memory_space<vmem>>, vector<64x16xf32>
    %cst_106 = arith.constant dense<0.000000e+00> : vector<8x16xf32>
    %277 = tpu.matmul %275, %276, %cst_106 {dimension_numbers = #tpu.dot_dimension_numbers<[1], [0], [0], [1], [0, 0, 1, 1], [], []>} : vector<8x64xf32>, vector<64x16xf32>, vector<8x16xf32> -> vector<8x16xf32>
    %c128 = arith.constant 128 : index
    %c0_107 = arith.constant 0 : index
    %278 = vector.load %arg1[%c128, %c0_107] : memref<136x320xf32, #tpu.memory_space<vmem>>, vector<1x16xf32>
    %279 = vector.broadcast %278 : vector<1x16xf32> to vector<8x16xf32>
    %280 = arith.addf %277, %279 : vector<8x16xf32>
    %c0_108 = arith.constant 0 : index
    %c0_109 = arith.constant 0 : index
    %281 = vector.load %arg5[%c0_108, %c0_109] : memref<8x16xf32, #tpu.memory_space<vmem>>, vector<8x16xf32>
    tpu.vector_store %arg5[%c0_108, %c0_109], %280 {strides = array<i32>} : memref<8x16xf32, #tpu.memory_space<vmem>>, vector<8x16xf32>,
    return
  }
}

</mosaic_0001>

<bundles_post_ra>
// kernel: conditional_denoising_forward.1
= control target key start
LH: loop header
LB: loop body
LE: loop exit
PB: predicated region body
PF: predicated region fallthrough
CT: control target
= control target key end

     0   :  { %10 = vsyncpa [#allocation3], 0  ;;  %s1666_s21 = smov [#allocation2]   ;;  %s1667_s23 = smov 768   ;;  %s2510_s0 = inlined_call_operand.vmem [shape: f32[8,56], index: 0, kind: input, shape index: {}]   ;;  %s2511_s1 = inlined_call_operand.vmem [shape: f32[136,320], index: 1, kind: input, shape index: {}]   ;;  %s2512_s2 = inlined_call_operand.hbm [shape: f32[264,768], index: 2, kind: input, shape index: {}]   ;;  %s2513_s3 = inlined_call_operand.vmem [shape: f32[3,64,256], index: 3, kind: input, shape index: {}]   ;;  %s2514_s4 = inlined_call_operand.vmem [shape: f32[3,256,64], index: 4, kind: input, shape index: {}]   ;;  %s2515_s5 = inlined_call_operand.vmem [shape: f32[8,16], index: 5, kind: output, shape index: {}]  }
   0x1   :  { %s19_s20 = sshll.u32 %s2512_s2, 4  ;;  %s21_s22 = sshll.u32 %s1666_s21, 4  ;;  %s20_s20 = int_to_ptr.hbm [resolvable:$true] %s19_s20  ;;  %s22_s22 = int_to_ptr.vmem [resolvable:$true] %s21_s22 }
   0x2   :  { %s1668_s24 = smov 48  }
   0x3   :  { %27 = dma.hbm_to_vmem [thread:$0]  %s20_s20, 25344, %s22_s22, [#allocation3], %s1667_s23, %s1667_s23, %s1668_s24  }
   0x4   :  { %1664 = dma.done.wait [#allocation3], 25344  }
   0x5   :  { %1665 = vsyncadd [#allocation3], 4294941952  ;;  %v55_v0 = vld [vmem:[%s2511_s1 + $0x90] sm:$0xff]  ;;  %v57_v1 = vld [vmem:[%s2511_s1 + $0xa0] sm:$0xff]  ;;  %vm67_vm0 = vcmask 457728  }
   0x6   :  { %v52_v2 = vld [vmem:[%s2511_s1 + $0x78] sm:$0xff]  ;;  %80 = vmatpush.msra.mxu0 %v55_v0  ;;  %120 = vmatpush.msra.mxu2 %v57_v1  ;;  %v54_v3 = vld [vmem:[%s2511_s1 + $0x88] sm:$0xff]  ;;  %v49_v4 = vld [vmem:[%s2511_s1 + $0x60] sm:$0xff] }
   0x7   :  { %v51_v5 = vld [vmem:[%s2511_s1 + $0x70] sm:$0xff]  ;;  %v46_v6 = vld [vmem:[%s2511_s1 + $0x48] sm:$0xff]  ;;  %v48_v7 = vld [vmem:[%s2511_s1 + $0x58] sm:$0xff] }
   0x8   :  { %81 = vmatpush.msra.mxu0 %v52_v2  ;;  %121 = vmatpush.msra.mxu2 %v54_v3  ;;  %v43_v8 = vld [vmem:[%s2511_s1 + $0x30] sm:$0xff]  ;;  %v45_v9 = vld [vmem:[%s2511_s1 + $0x40] sm:$0xff]  ;;  %v40_v10 = vld [vmem:[%s2511_s1 + $0x18] sm:$0xff] }
   0x9   :  { %v347_v11 = vld [vmem:[#allocation2 + $0x2d0] sm:$0xff]  ;;  %v348_v12 = vld [vmem:[#allocation2 + $0x2d8] sm:$0xff]  ;;  %v42_v13 = vld [vmem:[%s2511_s1 + $0x28] sm:$0xff] }
   0xa   :  { %82 = vmatpush.msra.mxu0 %v49_v4  ;;  %122 = vmatpush.msra.mxu2 %v51_v5  ;;  %v341_v14 = vld [vmem:[#allocation2 + $0x2a0] sm:$0xff]  ;;  %v342_v15 = vld [vmem:[#allocation2 + $0x2a8] sm:$0xff]  ;;  %v335_v16 = vld [vmem:[#allocation2 + $0x270] sm:$0xff] }
   0xb   :  { %455 = vmatpush.msra.mxu3 %v347_v11  ;;  %495 = vmatpush.msra.mxu1 %v348_v12  ;;  %v336_v17 = vld [vmem:[#allocation2 + $0x278] sm:$0xff]  ;;  %v37_v18 = vld [vmem:[%s2511_s1] sm:$0xff]  ;;  %v39_v19 = vld [vmem:[%s2511_s1 + $0x10] sm:$0xff] }
   0xc   :  { %83 = vmatpush.msra.mxu0 %v46_v6  ;;  %123 = vmatpush.msra.mxu2 %v48_v7  ;;  %v36_v20 = vld [vmem:[%s2510_s0] sm:$0xff]  ;;  %v56_v21 = vld [vmem:[%s2511_s1 + $0x98] sm:$0xff]  ;;  %v50_v23 = vld [vmem:[%s2511_s1 + $0x68] sm:$0xff] }
   0xd   :  { %456 = vmatpush.msra.mxu3 %v341_v14  ;;  %496 = vmatpush.msra.mxu1 %v342_v15  ;;  %v53_v22 = vld [vmem:[%s2511_s1 + $0x80] sm:$0xff]  ;;  %v47_v24 = vld [vmem:[%s2511_s1 + $0x50] sm:$0xff]  ;;  %v44_v25 = vld [vmem:[%s2511_s1 + $0x38] sm:$0xff] }
   0xe   :  { %84 = vmatpush.msra.mxu0 %v43_v8  ;;  %124 = vmatpush.msra.mxu2 %v45_v9  ;;  %v41_v26 = vld [vmem:[%s2511_s1 + $0x20] sm:$0xff]  ;;  %v38_v27 = vld [vmem:[%s2511_s1 + $0x8] sm:$0xff]  ;;  %v323_v30 = vld [vmem:[#allocation2 + $0x210] sm:$0xff] }
   0xf   :  { %457 = vmatpush.msra.mxu3 %v335_v16  ;;  %497 = vmatpush.msra.mxu1 %v336_v17  ;;  %v329_v28 = vld [vmem:[#allocation2 + $0x240] sm:$0xff]  ;;  %v330_v29 = vld [vmem:[#allocation2 + $0x248] sm:$0xff]  ;;  %v324_v31 = vld [vmem:[#allocation2 + $0x218] sm:$0xff] }
  0x10   :  { %85 = vmatpush.msra.mxu0 %v40_v10  ;;  %125 = vmatpush.msra.mxu2 %v42_v13  ;;  %v317_v32 = vld [vmem:[#allocation2 + $0x1e0] sm:$0xff]  ;;  %v318_v33 = vld [vmem:[#allocation2 + $0x1e8] sm:$0xff]  ;;  %v311_v34 = vld [vmem:[#allocation2 + $0x1b0] sm:$0xff] }
  0x11   :  { %458 = vmatpush.msra.mxu3 %v329_v28  ;;  %498 = vmatpush.msra.mxu1 %v330_v29  ;;  %v312_v35 = vld [vmem:[#allocation2 + $0x1b8] sm:$0xff]  ;;  %v443_v36 = vld [vmem:[#allocation2 + $0x5d0] sm:$0xff]  ;;  %v305_v38 = vld [vmem:[#allocation2 + $0x180] sm:$0xff] }
  0x12   :  { %86 = vmatpush.msra.mxu0 %v37_v18  ;;  %126 = vmatpush.msra.mxu2 %v39_v19  ;;  %v444_v37 = vld [vmem:[#allocation2 + $0x5d8] sm:$0xff]  ;;  %v306_v39 = vld [vmem:[#allocation2 + $0x188] sm:$0xff]  ;;  %v437_v40 = vld [vmem:[#allocation2 + $0x5a0] sm:$0xff] }
  0x13   :  { %1485 = vmatmul.msk.f32.vlgmr.msra.gmra.mxu0 %vm67_vm0, %v36_v20  ;;  %1487 = vmatmul.msk.f32.vlgmr.msra.gmra.mxu2 %vm67_vm0, %v36_v20  ;;  %v438_v41 = vld [vmem:[#allocation2 + $0x5a8] sm:$0xff]  ;;  %v299_v42 = vld [vmem:[#allocation2 + $0x150] sm:$0xff]  ;;  %v300_v43 = vld [vmem:[#allocation2 + $0x158] sm:$0xff] }
  0x14   :  { %100 = vmatpush.msrb.mxu0 %v56_v21  ;;  %459 = vmatpush.msra.mxu3 %v323_v30  ;;  %v431_v44 = vld [vmem:[#allocation2 + $0x570] sm:$0xff]  ;;  %v432_v45 = vld [vmem:[#allocation2 + $0x578] sm:$0xff]  ;;  %v293_v46 = vld [vmem:[#allocation2 + $0x120] sm:$0xff] }
  0x15   :  { %499 = vmatpush.msra.mxu1 %v324_v31  ;;  %515 = vmatpush.msrb.mxu2 %v444_v37  ;;  %v294_v47 = vld [vmem:[#allocation2 + $0x128] sm:$0xff]  ;;  %v425_v48 = vld [vmem:[#allocation2 + $0x540] sm:$0xff]  ;;  %v287_v50 = vld [vmem:[#allocation2 + $0xf0] sm:$0xff] }
  0x16   :  { %101 = vmatpush.msrb.mxu0 %v53_v22  ;;  %460 = vmatpush.msra.mxu3 %v317_v32  ;;  %v426_v49 = vld [vmem:[#allocation2 + $0x548] sm:$0xff]  ;;  %v288_v51 = vld [vmem:[#allocation2 + $0xf8] sm:$0xff]  ;;  %v419_v52 = vld [vmem:[#allocation2 + $0x510] sm:$0xff] }
  0x17   :  { %500 = vmatpush.msra.mxu1 %v318_v33  ;;  %516 = vmatpush.msrb.mxu2 %v438_v41  ;;  %v420_v53 = vld [vmem:[#allocation2 + $0x518] sm:$0xff]  ;;  %v281_v54 = vld [vmem:[#allocation2 + $0xc0] sm:$0xff]  ;;  %v282_v55 = vld [vmem:[#allocation2 + $0xc8] sm:$0xff] }
  0x18   :  { %102 = vmatpush.msrb.mxu0 %v50_v23  ;;  %461 = vmatpush.msra.mxu3 %v311_v34  ;;  %v413_v56 = vld [vmem:[#allocation2 + $0x4e0] sm:$0xff]  ;;  %v414_v57 = vld [vmem:[#allocation2 + $0x4e8] sm:$0xff]  ;;  %v275_v58 = vld [vmem:[#allocation2 + $0x90] sm:$0xff] }
  0x19   :  { %501 = vmatpush.msra.mxu1 %v312_v35  ;;  %517 = vmatpush.msrb.mxu2 %v432_v45  ;;  %v276_v59 = vld [vmem:[#allocation2 + $0x98] sm:$0xff]  ;;  %v407_v60 = vld [vmem:[#allocation2 + $0x4b0] sm:$0xff]  ;;  %v269_v62 = vld [vmem:[#allocation2 + $0x60] sm:$0xff] }
  0x1a   :  { %103 = vmatpush.msrb.mxu0 %v47_v24  ;;  %462 = vmatpush.msra.mxu3 %v305_v38  ;;  %v408_v61 = vld [vmem:[#allocation2 + $0x4b8] sm:$0xff]  ;;  %v270_v63 = vld [vmem:[#allocation2 + $0x68] sm:$0xff]  ;;  %v401_v0 = vld [vmem:[#allocation2 + $0x480] sm:$0xff] }
  0x1b   :  { %502 = vmatpush.msra.mxu1 %v306_v39  ;;  %518 = vmatpush.msrb.mxu2 %v426_v49  ;;  %v402_v1 = vld [vmem:[#allocation2 + $0x488] sm:$0xff]  ;;  %v263_v2 = vld [vmem:[#allocation2 + $0x30] sm:$0xff]  ;;  %v264_v3 = vld [vmem:[#allocation2 + $0x38] sm:$0xff] }
  0x1c   :  { %104 = vmatpush.msrb.mxu0 %v44_v25  ;;  %463 = vmatpush.msra.mxu3 %v299_v42  ;;  %v1775_v4 = vld [vmem:[%s2511_s1 + $0xa8] ss:$8 sm:$0x7]  ;;  %v257_v7 = vld [vmem:[#allocation2] sm:$0xff] }
  0x1d   :  { %503 = vmatpush.msra.mxu1 %v300_v43  ;;  %519 = vmatpush.msrb.mxu2 %v420_v53  ;;  %v395_v5 = vld [vmem:[#allocation2 + $0x450] sm:$0xff]  ;;  %v396_v6 = vld [vmem:[#allocation2 + $0x458] sm:$0xff]  ;;  %v258_v8 = vld [vmem:[#allocation2 + $0x8] sm:$0xff]  ;;  %v61_v12 = vperm.slane %v1775_v4, 0  ;;  %v63_v28 = vperm.slane %v1775_v4, 2 }
  0x1e   :  { %105 = vmatpush.msrb.mxu0 %v41_v26  ;;  %464 = vmatpush.msra.mxu3 %v293_v46  ;;  %v389_v9 = vld [vmem:[#allocation2 + $0x420] sm:$0xff]  ;;  %v390_v10 = vld [vmem:[#allocation2 + $0x428] sm:$0xff]  ;;  %v383_v14 = vld [vmem:[#allocation2 + $0x3f0] sm:$0xff] }
  0x1f   :  { %504 = vmatpush.msra.mxu1 %v294_v47  ;;  %520 = vmatpush.msrb.mxu2 %v414_v57  ;;  %v349_v11 = vld [vmem:[#allocation2 + $0x2e0] sm:$0xff]  ;;  %v350_v13 = vld [vmem:[#allocation2 + $0x2e8] sm:$0xff]  ;;  %v384_v15 = vld [vmem:[#allocation2 + $0x3f8] sm:$0xff] }
  0x20   :  { %106 = vmatpush.msrb.mxu0 %v38_v27  ;;  %465 = vmatpush.msra.mxu3 %v287_v50  ;;  %v343_v16 = vld [vmem:[#allocation2 + $0x2b0] sm:$0xff]  ;;  %v344_v17 = vld [vmem:[#allocation2 + $0x2b8] sm:$0xff]  ;;  %v377_v19 = vld [vmem:[#allocation2 + $0x3c0] sm:$0xff] }
  0x21   :  { %1486 = vmatmul.msk.f32.vlgmr.msrb.gmra.mxu0 %vm67_vm0, %v36_v20  ;;  %505 = vmatpush.msra.mxu1 %v288_v51  ;;  %v378_v20 = vld [vmem:[#allocation2 + $0x3c8] sm:$0xff]  ;;  %v337_v21 = vld [vmem:[#allocation2 + $0x280] sm:$0xff]  ;;  %v371_v24 = vld [vmem:[#allocation2 + $0x390] sm:$0xff]  ;;  %vm711_vm0 = vcmask 523264  }
  0x22   :  { %475 = vmatpush.msra.mxu0 %v443_v36  ;;  %466 = vmatpush.msra.mxu3 %v281_v54  ;;  %v338_v23 = vld [vmem:[#allocation2 + $0x288] sm:$0xff]  ;;  %v372_v25 = vld [vmem:[#allocation2 + $0x398] sm:$0xff]  ;;  %v331_v26 = vld [vmem:[#allocation2 + $0x250] sm:$0xff] }
  0x23   :  { %506 = vmatpush.msra.mxu1 %v282_v55  ;;  %521 = vmatpush.msrb.mxu2 %v408_v61  ;;  %v332_v29 = vld [vmem:[#allocation2 + $0x258] sm:$0xff]  ;;  %v365_v30 = vld [vmem:[#allocation2 + $0x360] sm:$0xff]  ;;  %v366_v31 = vld [vmem:[#allocation2 + $0x368] sm:$0xff] }
  0x24   :  { %476 = vmatpush.msra.mxu0 %v437_v40  ;;  %467 = vmatpush.msra.mxu3 %v275_v58  ;;  %v325_v32 = vld [vmem:[#allocation2 + $0x220] sm:$0xff]  ;;  %v326_v34 = vld [vmem:[#allocation2 + $0x228] sm:$0xff]  ;;  %v359_v36 = vld [vmem:[#allocation2 + $0x330] sm:$0xff] }
  0x25   :  { %507 = vmatpush.msra.mxu1 %v276_v59  ;;  %522 = vmatpush.msrb.mxu2 %v402_v1  ;;  %v360_v37 = vld [vmem:[#allocation2 + $0x338] sm:$0xff]  ;;  %v319_v38 = vld [vmem:[#allocation2 + $0x1f0] sm:$0xff]  ;;  %v353_v42 = vld [vmem:[#allocation2 + $0x300] sm:$0xff] }
  0x26   :  { %477 = vmatpush.msra.mxu0 %v431_v44  ;;  %468 = vmatpush.msra.mxu3 %v269_v62  ;;  %v320_v41 = vld [vmem:[#allocation2 + $0x1f8] sm:$0xff]  ;;  %v354_v43 = vld [vmem:[#allocation2 + $0x308] sm:$0xff]  ;;  %v313_v44 = vld [vmem:[#allocation2 + $0x1c0] sm:$0xff] }
  0x27   :  { %508 = vmatpush.msra.mxu1 %v270_v63  ;;  %523 = vmatpush.msrb.mxu2 %v396_v6  ;;  %v314_v47 = vld [vmem:[#allocation2 + $0x1c8] sm:$0xff]  ;;  %v307_v50 = vld [vmem:[#allocation2 + $0x190] sm:$0xff]  ;;  %v308_v51 = vld [vmem:[#allocation2 + $0x198] sm:$0xff] }
  0x28   :  { %478 = vmatpush.msra.mxu0 %v425_v48  ;;  %469 = vmatpush.msra.mxu3 %v263_v2  ;;  %v445_v48 = vld [vmem:[#allocation2 + $0x5e0] sm:$0xff]  ;;  %v446_v49 = vld [vmem:[#allocation2 + $0x5e8] sm:$0xff]  ;;  %v439_v53 = vld [vmem:[#allocation2 + $0x5b0] sm:$0xff] }
  0x29   :  { %509 = vmatpush.msra.mxu1 %v264_v3  ;;  %524 = vmatpush.msrb.mxu2 %v390_v10  ;;  %v440_v54 = vld [vmem:[#allocation2 + $0x5b8] sm:$0xff]  ;;  %v302_v57 = vld [vmem:[#allocation2 + $0x168] sm:$0xff]  ;;  %v433_v58 = vld [vmem:[#allocation2 + $0x580] sm:$0xff] }
  0x2a   :  { %479 = vmatpush.msra.mxu0 %v419_v52  ;;  %470 = vmatpush.msra.mxu3 %v257_v7  ;;  %v62_v52 = vperm.slane %v1775_v4, 1  ;;  %v434_v59 = vld [vmem:[#allocation2 + $0x588] sm:$0xff]  ;;  %v295_v62 = vld [vmem:[#allocation2 + $0x130] sm:$0xff]  ;;  %v296_v63 = vld [vmem:[#allocation2 + $0x138] sm:$0xff] }
  0x2b   :  { %510 = vmatpush.msra.mxu1 %v258_v8  ;;  %525 = vmatpush.msrb.mxu2 %v384_v15  ;;  %v427_v1 = vld [vmem:[#allocation2 + $0x550] sm:$0xff]  ;;  %v428_v2 = vld [vmem:[#allocation2 + $0x558] sm:$0xff]  ;;  %v289_v3 = vld [vmem:[#allocation2 + $0x100] sm:$0xff] }
  0x2c   :  { %480 = vmatpush.msra.mxu0 %v413_v56  ;;  %535 = vmatpush.msrb.mxu3 %v349_v11  ;;  %v301_v56 = vld [vmem:[#allocation2 + $0x160] sm:$0xff]  ;;  %v290_v4 = vld [vmem:[#allocation2 + $0x108] sm:$0xff]  ;;  %v283_v11 = vld [vmem:[#allocation2 + $0xd0] sm:$0xff] }
  0x2d   :  { %575 = vmatpush.msrb.mxu1 %v350_v13  ;;  %526 = vmatpush.msrb.mxu2 %v378_v20  ;;  %v421_v8 = vld [vmem:[#allocation2 + $0x520] sm:$0xff]  ;;  %v415_v15 = vld [vmem:[#allocation2 + $0x4f0] sm:$0xff] }
  0x2e   :  { %481 = vmatpush.msra.mxu0 %v407_v60  ;;  %536 = vmatpush.msrb.mxu3 %v343_v16  ;;  %v416_v16 = vld [vmem:[#allocation2 + $0x4f8] sm:$0xff]  ;;  %v409_v20 = vld [vmem:[#allocation2 + $0x4c0] sm:$0xff] }
  0x2f   :  { %576 = vmatpush.msrb.mxu1 %v344_v17  ;;  %527 = vmatpush.msrb.mxu2 %v372_v25  ;;  %v277_v17 = vld [vmem:[#allocation2 + $0xa0] sm:$0xff] }
  0x30   :  { %482 = vmatpush.msra.mxu0 %v401_v0  ;;  %537 = vmatpush.msrb.mxu3 %v337_v21  ;;  %v410_v21 = vld [vmem:[#allocation2 + $0x4c8] sm:$0xff] }
  0x31   :  { %577 = vmatpush.msrb.mxu1 %v338_v23  ;;  %528 = vmatpush.msrb.mxu2 %v366_v31 }
  0x32   :  { %483 = vmatpush.msra.mxu0 %v395_v5  ;;  %538 = vmatpush.msrb.mxu3 %v331_v26  ;;  %v271_v26 = vld [vmem:[#allocation2 + $0x70] sm:$0xff] }
  0x33   :  { %578 = vmatpush.msrb.mxu1 %v332_v29  ;;  %529 = vmatpush.msrb.mxu2 %v360_v37  ;;  %v403_v29 = vld [vmem:[#allocation2 + $0x490] sm:$0xff]  ;;  %v397_v37 = vld [vmem:[#allocation2 + $0x460] sm:$0xff] }
  0x34   :  { %484 = vmatpush.msra.mxu0 %v389_v9  ;;  %539 = vmatpush.msrb.mxu3 %v325_v32  ;;  %v422_v9 = vld [vmem:[#allocation2 + $0x528] sm:$0xff] }
  0x35   :  { %579 = vmatpush.msrb.mxu1 %v326_v34  ;;  %530 = vmatpush.msrb.mxu2 %v354_v43  ;;  %v265_v34 = vld [vmem:[#allocation2 + $0x40] sm:$0xff] }
  0x36   :  { %485 = vmatpush.msra.mxu0 %v383_v14  ;;  %540 = vmatpush.msrb.mxu3 %v319_v38  ;;  %v398_v38 = vld [vmem:[#allocation2 + $0x468] sm:$0xff] }
  0x37   :  { %580 = vmatpush.msrb.mxu1 %v320_v41  ;;  %595 = vmatpush.msra.mxu2 %v446_v49  ;;  %v259_v41 = vld [vmem:[#allocation2 + $0x10] sm:$0xff] }
  0x38   :  { %486 = vmatpush.msra.mxu0 %v377_v19  ;;  %541 = vmatpush.msrb.mxu3 %v313_v44  ;;  %v278_v19 = vld [vmem:[#allocation2 + $0xa8] sm:$0xff] }
  0x39   :  { %581 = vmatpush.msrb.mxu1 %v314_v47  ;;  %596 = vmatpush.msra.mxu2 %v440_v54  ;;  %v391_v47 = vld [vmem:[#allocation2 + $0x430] sm:$0xff] }
  0x3a   :  { %487 = vmatpush.msra.mxu0 %v371_v24  ;;  %542 = vmatpush.msrb.mxu3 %v307_v50  ;;  %v385_v50 = vld [vmem:[#allocation2 + $0x400] sm:$0xff] }
  0x3b   :  { %582 = vmatpush.msrb.mxu1 %v308_v51  ;;  %597 = vmatpush.msra.mxu2 %v434_v59  ;;  %v386_v51 = vld [vmem:[#allocation2 + $0x408] sm:$0xff] }
  0x3c   :  { %488 = vmatpush.msra.mxu0 %v365_v30  ;;  %543 = vmatpush.msrb.mxu3 %v301_v56  ;;  %v404_v30 = vld [vmem:[#allocation2 + $0x498] sm:$0xff]  ;;  %v379_v56 = vld [vmem:[#allocation2 + $0x3d0] sm:$0xff] }
  0x3d   :  { %583 = vmatpush.msrb.mxu1 %v302_v57  ;;  %598 = vmatpush.msra.mxu2 %v428_v2  ;;  %v380_v57 = vld [vmem:[#allocation2 + $0x3d8] sm:$0xff] }
  0x3e   :  { %489 = vmatpush.msra.mxu0 %v359_v36  ;;  %544 = vmatpush.msrb.mxu3 %v295_v62  ;;  %v374_v62 = vld [vmem:[#allocation2 + $0x3a8] sm:$0xff] }
  0x3f   :  { %584 = vmatpush.msrb.mxu1 %v296_v63  ;;  %599 = vmatpush.msra.mxu2 %v422_v9 }
  0x40   :  { %490 = vmatpush.msra.mxu0 %v353_v42  ;;  %545 = vmatpush.msrb.mxu3 %v289_v3  ;;  %v260_v42 = vld [vmem:[#allocation2 + $0x18] sm:$0xff] }
  0x41   :  { %585 = vmatpush.msrb.mxu1 %v290_v4  ;;  %600 = vmatpush.msra.mxu2 %v416_v16  ;;  %v368_v4 = vld [vmem:[#allocation2 + $0x378] sm:$0xff]  ;;  %v355_v16 = vld [vmem:[#allocation2 + $0x310] sm:$0xff] }
  0x42   :  { %555 = vmatpush.msrb.mxu0 %v445_v48  ;;  %546 = vmatpush.msrb.mxu3 %v283_v11  ;;  %v392_v48 = vld [vmem:[#allocation2 + $0x438] sm:$0xff]  ;;  %v361_v11 = vld [vmem:[#allocation2 + $0x340] sm:$0xff] }
  0x43   :  { %601 = vmatpush.msra.mxu2 %v410_v21 }
  0x44   :  { %556 = vmatpush.msrb.mxu0 %v439_v53  ;;  %547 = vmatpush.msrb.mxu3 %v277_v17  ;;  %v356_v17 = vld [vmem:[#allocation2 + $0x318] sm:$0xff] }
  0x45   :  { %602 = vmatpush.msra.mxu2 %v404_v30 }
  0x46   :  { %557 = vmatpush.msrb.mxu0 %v433_v58  ;;  %548 = vmatpush.msrb.mxu3 %v271_v26 }
  0x47   :  { %603 = vmatpush.msra.mxu2 %v398_v38 }
  0x48   :  { %558 = vmatpush.msrb.mxu0 %v427_v1  ;;  %549 = vmatpush.msrb.mxu3 %v265_v34 }
  0x49   :  { %604 = vmatpush.msra.mxu2 %v392_v48 }
  0x4a   :  { %559 = vmatpush.msrb.mxu0 %v421_v8  ;;  %550 = vmatpush.msrb.mxu3 %v259_v41 }
  0x4b   :  { %605 = vmatpush.msra.mxu2 %v386_v51 }
  0x4c   :  { %560 = vmatpush.msrb.mxu0 %v415_v15 }
  0x4d   :  { %606 = vmatpush.msra.mxu2 %v380_v57 }
  0x4e   :  { %561 = vmatpush.msrb.mxu0 %v409_v20 }
  0x4f   :  { %607 = vmatpush.msra.mxu2 %v374_v62 }
  0x50   :  { %562 = vmatpush.msrb.mxu0 %v403_v29 }
  0x51   :  { %608 = vmatpush.msra.mxu2 %v368_v4  ;;  %v328_v4 = vld [vmem:[#allocation2 + $0x238] sm:$0xff] }
  0x52   :  { %563 = vmatpush.msrb.mxu0 %v397_v37 }
  0x54   :  { %564 = vmatpush.msrb.mxu0 %v391_v47 }
  0x56   :  { %565 = vmatpush.msrb.mxu0 %v385_v50 }
  0x58   :  { %566 = vmatpush.msrb.mxu0 %v379_v56 }
  0x90   :  { %v88_v18 = vpop.f32.mrf.mxu0 }
  0x91   :  { %v1778_v22 = vadd.f32 %v88_v18, %v61_v12  ;;  %v284_v12 = vld [vmem:[#allocation2 + $0xd8] sm:$0xff] }
  0x92   :  { %586 = vmatpush.msrb.mxu1 %v284_v12  ;;  %v362_v12 = vld [vmem:[#allocation2 + $0x348] sm:$0xff] }
  0x93   :  { %v1781_v27 = vmul.f32 0.70710677, %v1778_v22  ;;  %609 = vmatpush.msra.mxu2 %v362_v12  ;;  %v131_v50 = vmul.f32 0.5, %v1778_v22  ;;  %v339_v22 = vld [vmem:[#allocation2 + $0x290] sm:$0xff] }
  0x94   :  { %587 = vmatpush.msrb.mxu1 %v278_v19 }
  0x95   :  { %v1785_v33 = vand.u32 2147483647, %v1781_v27  ;;  %610 = vmatpush.msra.mxu2 %v356_v17  ;;  %vm236_vm13 = vcmp.ge.f32.partialorder %v1781_v27, 0.0  ;;  %v345_v27 = vld [vmem:[#allocation2 + $0x2c0] sm:$0xff] }
  0x96   :  { %v128_v35 = vpop.f32.mrf.mxu2 }
  0x97   :  { %v140_v39 = vmul.f32 0.3275911, %v1785_v33  ;;  %v1788_v40 = vadd.f32 %v128_v35, %v63_v28  ;;  %v272_v28 = vld [vmem:[#allocation2 + $0x78] sm:$0xff]  ;;  %v266_v35 = vld [vmem:[#allocation2 + $0x48] sm:$0xff] }
  0x98   :  { %588 = vmatpush.msrb.mxu1 %v272_v28 }
  0x99   :  { %v1790_v45 = vadd.f32 1.0, %v140_v39  ;;  %v1793_v46 = vmul.f32 0.70710677, %v1788_v40 }
  0x9a   :  { %589 = vmatpush.msrb.mxu1 %v266_v35 }
  0x9b   :  { %1595 = vrcp.f32 %v1790_v45  ;;  %v1798_v55 = vand.u32 2147483647, %v1793_v46  ;;  %v157_v18 = vand.u32 2147483648, %v1790_v45  ;;  %v155_v24 = vand.u32 2147483647, %v1790_v45 }
  0x9c   :  { %vm151_vm2 = vweird.f32 %v1790_v45  ;;  %590 = vmatpush.msrb.mxu1 %v260_v42  ;;  %vm238_vm15 = vcmp.ge.f32.partialorder %v1793_v46, 0.0  ;;  %v699_v46 = vld [vmem:[%s2513_s3 + $0x20] sm:$0xff] }
  0x9d   :  { %v142_v60 = vmul.f32 0.3275911, %v1798_v55  ;;  %v158_v36 = vor.u32 1.1754944e-38, %v157_v18  ;;  %vm156_vm4 = vcmp.eq.f32.partialorder %v155_v24, 8.507059e+37 }
  0x9e   :  { %v108_v61 = vpop.f32.mrf.mxu0 }
  0x9f   :  { %v1801_v0 = vadd.f32 %v108_v61, %v62_v52  ;;  %v1805_v6 = vadd.f32 1.0, %v142_v60  ;;  %v373_v61 = vld [vmem:[#allocation2 + $0x3a0] sm:$0xff] }
  0xa0   :  { %567 = vmatpush.msrb.mxu0 %v373_v61 }
  0xa1   :  { %v1803_v5 = vpop.eup %1595  ;;  %v1808_v7 = vmul.f32 0.70710677, %v1801_v0  ;;  %1597 = vrcp.f32 %v1805_v6  ;;  %vm181_vm7 = vweird.f32 %v1805_v6  ;;  %v185_v21 = vand.u32 2147483647, %v1805_v6 }
  0xa2   :  { %v147_v10 = vmul.f32 %v1803_v5, %v1790_v45  ;;  %vm152_vm1 = vweird.f32 %v1803_v5  ;;  %v218_v45 = vsub.f32 0.0, %v1785_v33  ;;  %v132_v17 = vmul.f32 0.5, %v1801_v0  ;;  %v442_v0 = vld [vmem:[#allocation2 + $0x5c8] sm:$0xff] }
  0xa3   :  { %v1813_v14 = vand.u32 2147483647, %v1808_v7  ;;  %vm153_vm3 = vmor %vm151_vm2, %vm152_vm1  ;;  %vm186_vm12 = vcmp.eq.f32.partialorder %v185_v21, 8.507059e+37  ;;  %vm237_vm14 = vcmp.ge.f32.partialorder %v1808_v7, 0.0  ;;  %v448_v7 = vld [vmem:[#allocation2 + $0x5f8] sm:$0xff] }
  0xa4   :  { %v148_v13 = vsub.f32 1.0, %v147_v10  ;;  %v221_v54 = vmul.f32 %v218_v45, %v1785_v33  ;;  %v367_v33 = vld [vmem:[#allocation2 + $0x370] sm:$0xff] }
  0xa5   :  { %v141_v25 = vmul.f32 0.3275911, %v1813_v14  ;;  %568 = vmatpush.msrb.mxu0 %v367_v33  ;;  %v219_v29 = vsub.f32 0.0, %v1813_v14  ;;  %v327_v33 = vld [vmem:[#allocation2 + $0x230] sm:$0xff] }
  0xa6   :  { %v149_v23 = vmul.f32 %v1803_v5, %v148_v13  ;;  %v224_v2 = vmul.f32 1.442695, %v221_v54  ;;  %v352_v54 = vld [vmem:[#allocation2 + $0x2f8] sm:$0xff] }
  0xa7   :  { %v1823_v32 = vadd.f32 1.0, %v141_v25  ;;  %v1829_v43 = vpop.eup %1597  ;;  %569 = vmatpush.msrb.mxu0 %v361_v11  ;;  %v222_v37 = vmul.f32 %v219_v29, %v1813_v14  ;;  %v220_v11 = vsub.f32 0.0, %v1798_v55  ;;  %v304_v29 = vld [vmem:[#allocation2 + $0x178] sm:$0xff] }
  0xa8   :  { %v150_v31 = vadd.f32 %v1803_v5, %v149_v23  ;;  %v177_v53 = vmul.f32 %v1829_v43, %v1805_v6  ;;  %vm182_vm8 = vweird.f32 %v1829_v43  ;;  %v187_v23 = vand.u32 2147483648, %v1805_v6 }
  0xa9   :  { %1599 = vrcp.f32 %v1823_v32  ;;  %v172_v8 = vand.u32 2147483648, %v1823_v32  ;;  %v170_v10 = vand.u32 2147483647, %v1823_v32  ;;  %vm166_vm6 = vweird.f32 %v1823_v32  ;;  %570 = vmatpush.msrb.mxu0 %v355_v16  ;;  %vm183_vm11 = vmor %vm181_vm7, %vm182_vm8 }
  0xaa   :  { %v154_v39 = vsel %vm153_vm3, %v1803_v5, %v150_v31  ;;  %v178_v1 = vsub.f32 1.0, %v177_v53  ;;  %1601 = vpow2.f32 %v224_v2  ;;  %v188_v34 = vor.u32 1.1754944e-38, %v187_v23  ;;  %v351_v53 = vld [vmem:[#allocation2 + $0x2f0] sm:$0xff]  ;;  %v334_v2 = vld [vmem:[#allocation2 + $0x268] sm:$0xff]  ;;  %v309_v23 = vld [vmem:[#allocation2 + $0x1a0] sm:$0xff] }
  0xab   :  { %v1831_v44 = vsel %vm156_vm4, %v158_v36, %v154_v39  ;;  %v173_v20 = vor.u32 1.1754944e-38, %v172_v8  ;;  %vm171_vm10 = vcmp.eq.f32.partialorder %v170_v10, 8.507059e+37  ;;  %v226_v47 = vmul.f32 1.442695, %v222_v37  ;;  %v322_v10 = vld [vmem:[#allocation2 + $0x208] sm:$0xff]  ;;  %v291_v37 = vld [vmem:[#allocation2 + $0x110] sm:$0xff] }
  0xac   :  { %v191_v49 = vmul.f32 1.0614054, %v1831_v44  ;;  %v179_v15 = vmul.f32 %v1829_v43, %v178_v1  ;;  %v333_v1 = vld [vmem:[#allocation2 + $0x260] sm:$0xff]  ;;  %v223_v21 = vmul.f32 %v220_v11, %v1798_v55  ;;  %v705_v11 = vld [vmem:[%s2513_s3 + $0x50] sm:$0xff] }
  0xad   :  { %1603 = vpow2.f32 %v226_v47  ;;  %v297_v55 = vld [vmem:[#allocation2 + $0x140] sm:$0xff] }
  0xae   :  { %v194_v52 = vadd.f32 -1.4531521, %v191_v49  ;;  %v180_v26 = vadd.f32 %v1829_v43, %v179_v15  ;;  %v316_v15 = vld [vmem:[#allocation2 + $0x1d8] sm:$0xff]  ;;  %v285_v47 = vld [vmem:[#allocation2 + $0xe0] sm:$0xff] }
  0xaf   :  { %v1600_v58 = vpop.eup %1599 }
  0xb0   :  { %v197_v59 = vmul.f32 %v194_v52, %v1831_v44  ;;  %v162_v60 = vmul.f32 %v1600_v58, %v1823_v32  ;;  %vm167_vm5 = vweird.f32 %v1600_v58  ;;  %v1602_v32 = vpop.eup %1601  ;;  %v184_v6 = vsel %vm183_vm11, %v1829_v43, %v180_v26  ;;  %v441_v26 = vld [vmem:[#allocation2 + $0x5c0] sm:$0xff] }
  0xb1   :  { %vm168_vm9 = vmor %vm166_vm6, %vm167_vm5  ;;  %v1856_v41 = vsel %vm186_vm12, %v188_v34, %v184_v6  ;;  %v298_v34 = vld [vmem:[#allocation2 + $0x148] sm:$0xff] }
  0xb2   :  { %v200_v63 = vadd.f32 1.4214138, %v197_v59  ;;  %v163_v3 = vsub.f32 1.0, %v162_v60  ;;  %v193_v49 = vmul.f32 1.0614054, %v1856_v41  ;;  %v340_v60 = vld [vmem:[#allocation2 + $0x298] sm:$0xff] }
  0xb3   :  { %v1604_v61 = vpop.eup %1603  ;;  %v430_v6 = vld [vmem:[#allocation2 + $0x568] sm:$0xff] }
  0xb4   :  { %v203_v5 = vmul.f32 %v200_v63, %v1831_v44  ;;  %v164_v9 = vmul.f32 %v1600_v58, %v163_v3  ;;  %v196_v56 = vadd.f32 -1.4531521, %v193_v49  ;;  %v418_v49 = vld [vmem:[#allocation2 + $0x508] sm:$0xff] }
  0xb6   :  { %v206_v13 = vadd.f32 -0.28449672, %v203_v5  ;;  %v165_v18 = vadd.f32 %v1600_v58, %v164_v9  ;;  %v199_v62 = vmul.f32 %v196_v56, %v1856_v41  ;;  %v321_v9 = vld [vmem:[#allocation2 + $0x200] sm:$0xff]  ;;  %v274_v56 = vld [vmem:[#allocation2 + $0x88] sm:$0xff] }
  0xb8   :  { %v209_v19 = vmul.f32 %v206_v13, %v1831_v44  ;;  %v169_v24 = vsel %vm168_vm9, %v1600_v58, %v165_v18  ;;  %v346_v58 = vld [vmem:[#allocation2 + $0x2c8] sm:$0xff]  ;;  %v202_v5 = vadd.f32 1.4214138, %v199_v62  ;;  %v315_v13 = vld [vmem:[#allocation2 + $0x1d0] sm:$0xff] }
  0xb9   :  { %v174_v28 = vsel %vm171_vm10, %v173_v20, %v169_v24  ;;  %v447_v20 = vld [vmem:[#allocation2 + $0x5f0] sm:$0xff]  ;;  %v310_v24 = vld [vmem:[#allocation2 + $0x1a8] sm:$0xff] }
  0xba   :  { %v212_v25 = vadd.f32 0.2548296, %v209_v19  ;;  %v192_v30 = vmul.f32 1.0614054, %v174_v28  ;;  %v205_v16 = vmul.f32 %v202_v5, %v1856_v41  ;;  %v388_v5 = vld [vmem:[#allocation2 + $0x418] sm:$0xff] }
  0xbc   :  { %v215_v31 = vmul.f32 %v212_v25, %v1831_v44  ;;  %v195_v35 = vadd.f32 -1.4531521, %v192_v30  ;;  %v208_v25 = vadd.f32 -0.28449672, %v205_v16  ;;  %v435_v30 = vld [vmem:[#allocation2 + $0x590] sm:$0xff]  ;;  %v369_v16 = vld [vmem:[#allocation2 + $0x380] sm:$0xff] }
  0xbe   :  { %v230_v36 = vmul.f32 %v1602_v32, %v215_v31  ;;  %v198_v38 = vmul.f32 %v195_v35, %v174_v28  ;;  %v436_v31 = vld [vmem:[#allocation2 + $0x598] sm:$0xff]  ;;  %v228_v32 = vmul.f32 1.442695, %v223_v21  ;;  %v211_v35 = vmul.f32 %v208_v25, %v1856_v41 }
  0xbf   :  { %v364_v21 = vld [vmem:[#allocation2 + $0x358] sm:$0xff] }
  0xc0   :  { %v233_v39 = vsub.f32 1.0, %v230_v36  ;;  %v201_v42 = vadd.f32 1.4214138, %v198_v38  ;;  %v429_v36 = vld [vmem:[#allocation2 + $0x560] sm:$0xff]  ;;  %v292_v38 = vld [vmem:[#allocation2 + $0x118] sm:$0xff]  ;;  %1605 = vpow2.f32 %v228_v32 }
  0xc1   :  { %v702_v32 = vld [vmem:[%s2513_s3 + $0x38] sm:$0xff] }
  0xc2   :  { %v239_v45 = vsub.f32 0.0, %v233_v39  ;;  %v204_v48 = vmul.f32 %v201_v42, %v174_v28  ;;  %v424_v42 = vld [vmem:[#allocation2 + $0x538] sm:$0xff] }
  0xc4   :  { %v242_v44 = vsel %vm236_vm13, %v233_v39, %v239_v45  ;;  %v207_v43 = vadd.f32 -0.28449672, %v204_v48  ;;  %v423_v39 = vld [vmem:[#allocation2 + $0x530] sm:$0xff]  ;;  %v214_v45 = vadd.f32 0.2548296, %v211_v35  ;;  %v286_v48 = vld [vmem:[#allocation2 + $0xe8] sm:$0xff] }
  0xc5   :  { %v245_v51 = vadd.f32 1.0, %v242_v44  ;;  %v417_v44 = vld [vmem:[#allocation2 + $0x500] sm:$0xff]  ;;  %v696_v35 = vld [vmem:[%s2513_s3 + $0x8] sm:$0xff] }
  0xc6   :  { %v210_v14 = vmul.f32 %v207_v43, %v174_v28  ;;  %v411_v43 = vld [vmem:[#allocation2 + $0x4d0] sm:$0xff] }
  0xc7   :  { %v1861_v52 = vmul.f32 %v245_v51, %v131_v50  ;;  %v279_v50 = vld [vmem:[#allocation2 + $0xb0] sm:$0xff]  ;;  %v280_v51 = vld [vmem:[#allocation2 + $0xb8] sm:$0xff] }
  0xc8   :  { %v213_v57 = vadd.f32 0.2548296, %v210_v14  ;;  %v412_v14 = vld [vmem:[#allocation2 + $0x4d8] sm:$0xff] }
  0xc9   :  { %471 = vmatmul.f32.vlgmr.msra.gmra.mxu3 %v1861_v52  ;;  %511 = vmatmul.f32.vlgmr.msra.gmra.mxu1 %v1861_v52 }
  0xca   :  { %615 = vmatpush.msra.mxu3 %v351_v53  ;;  %655 = vmatpush.msra.mxu1 %v352_v54  ;;  %v216_v59 = vmul.f32 %v213_v57, %v174_v28  ;;  %v303_v28 = vld [vmem:[#allocation2 + $0x170] sm:$0xff]  ;;  %v217_v53 = vmul.f32 %v214_v45, %v1856_v41  ;;  %v273_v54 = vld [vmem:[#allocation2 + $0x80] sm:$0xff]  ;;  %v1606_v57 = vpop.eup %1605 }
  0xcb   :  { %v261_v41 = vld [vmem:[#allocation2 + $0x20] sm:$0xff] }
  0xcc   :  { %616 = vmatpush.msra.mxu3 %v345_v27  ;;  %656 = vmatpush.msra.mxu1 %v346_v58  ;;  %v231_v63 = vmul.f32 %v1604_v61, %v216_v59  ;;  %v405_v27 = vld [vmem:[#allocation2 + $0x4a0] sm:$0xff]  ;;  %v406_v58 = vld [vmem:[#allocation2 + $0x4a8] sm:$0xff]  ;;  %v267_v59 = vld [vmem:[#allocation2 + $0x50] sm:$0xff]  ;;  %v232_v62 = vmul.f32 %v1606_v57, %v217_v53 }
  0xcd   :  { %v400_v61 = vld [vmem:[#allocation2 + $0x478] sm:$0xff] }
  0xce   :  { %617 = vmatpush.msra.mxu3 %v339_v22  ;;  %657 = vmatpush.msra.mxu1 %v340_v60  ;;  %v234_v3 = vsub.f32 1.0, %v231_v63  ;;  %v268_v22 = vld [vmem:[#allocation2 + $0x58] sm:$0xff]  ;;  %v399_v60 = vld [vmem:[#allocation2 + $0x470] sm:$0xff]  ;;  %v262_v63 = vld [vmem:[#allocation2 + $0x28] sm:$0xff] }
  0xd0   :  { %618 = vmatpush.msra.mxu3 %v333_v1  ;;  %658 = vmatpush.msra.mxu1 %v334_v2  ;;  %v240_v8 = vsub.f32 0.0, %v234_v3  ;;  %v393_v1 = vld [vmem:[#allocation2 + $0x440] sm:$0xff]  ;;  %v394_v2 = vld [vmem:[#allocation2 + $0x448] sm:$0xff] }
  0xd1   :  { %551 = vmatmul.f32.vlgmr.msrb.gmra.mxu3 %v1861_v52  ;;  %591 = vmatmul.f32.vlgmr.msrb.gmra.mxu1 %v1861_v52 }
  0xd2   :  { %619 = vmatpush.msra.mxu3 %v327_v33  ;;  %659 = vmatpush.msra.mxu1 %v328_v4  ;;  %v243_v12 = vsel %vm237_vm14, %v234_v3, %v240_v8  ;;  %v709_v3 = vld [vmem:[%s2513_s3 + $0x70] sm:$0xff]  ;;  %v235_v4 = vsub.f32 1.0, %v232_v62  ;;  %v707_v8 = vld [vmem:[%s2513_s3 + $0x60] sm:$0xff] }
  0xd3   :  { %v246_v18 = vadd.f32 1.0, %v243_v12  ;;  %v387_v33 = vld [vmem:[#allocation2 + $0x410] sm:$0xff] }
  0xd4   :  { %620 = vmatpush.msra.mxu3 %v321_v9  ;;  %660 = vmatpush.msra.mxu1 %v322_v10  ;;  %v381_v9 = vld [vmem:[#allocation2 + $0x3e0] sm:$0xff]  ;;  %v382_v10 = vld [vmem:[#allocation2 + $0x3e8] sm:$0xff]  ;;  %v375_v12 = vld [vmem:[#allocation2 + $0x3b0] sm:$0xff] }
  0xd5   :  { %v1872_v19 = vmul.f32 %v246_v18, %v132_v17  ;;  %v370_v17 = vld [vmem:[#allocation2 + $0x388] sm:$0xff]  ;;  %v701_v18 = vld [vmem:[%s2513_s3 + $0x30] sm:$0xff] }
  0xd6   :  { %621 = vmatpush.msra.mxu3 %v315_v13  ;;  %661 = vmatpush.msra.mxu1 %v316_v15  ;;  %v241_v13 = vsub.f32 0.0, %v235_v4  ;;  %v376_v15 = vld [vmem:[#allocation2 + $0x3b8] sm:$0xff] }
  0xd7   :  { %491 = vmatmul.f32.vlgmr.msra.gmra.mxu0 %v1872_v19  ;;  %531 = vmatmul.f32.vlgmr.msrb.gmra.mxu2 %v1872_v19 }
  0xd8   :  { %635 = vmatpush.msra.mxu0 %v447_v20  ;;  %675 = vmatpush.msrb.mxu2 %v448_v7  ;;  %v363_v20 = vld [vmem:[#allocation2 + $0x350] sm:$0xff]  ;;  %v244_v7 = vsel %vm238_vm15, %v235_v4, %v241_v13 }
  0xd9   :  { %622 = vmatpush.msra.mxu3 %v309_v23  ;;  %662 = vmatpush.msra.mxu1 %v310_v24  ;;  %v357_v23 = vld [vmem:[#allocation2 + $0x320] sm:$0xff]  ;;  %v358_v24 = vld [vmem:[#allocation2 + $0x328] sm:$0xff]  ;;  %v247_v25 = vadd.f32 1.0, %v244_v7 }
  0xda   :  { %636 = vmatpush.msra.mxu0 %v441_v26  ;;  %676 = vmatpush.msrb.mxu2 %v442_v0  ;;  %v697_v26 = vld [vmem:[%s2513_s3 + $0x10] sm:$0xff]  ;;  %v710_v0 = vld [vmem:[%s2513_s3 + $0x78] sm:$0xff] }
  0xdb   :  { %623 = vmatpush.msra.mxu3 %v303_v28  ;;  %663 = vmatpush.msra.mxu1 %v304_v29  ;;  %v133_v28 = vmul.f32 0.5, %v1788_v40  ;;  %v695_v29 = vld [vmem:[%s2513_s3] sm:$0xff]  ;;  %v706_v40 = vld [vmem:[%s2513_s3 + $0x58] sm:$0xff] }
  0xdc   :  { %637 = vmatpush.msra.mxu0 %v435_v30  ;;  %677 = vmatpush.msrb.mxu2 %v436_v31  ;;  %v708_v30 = vld [vmem:[%s2513_s3 + $0x68] sm:$0xff] }
  0xdd   :  { %624 = vmatpush.msra.mxu3 %v297_v55  ;;  %664 = vmatpush.msra.mxu1 %v298_v34  ;;  %v1917_v31 = vmul.f32 %v247_v25, %v133_v28  ;;  %v700_v55 = vld [vmem:[%s2513_s3 + $0x28] sm:$0xff]  ;;  %v698_v34 = vld [vmem:[%s2513_s3 + $0x18] sm:$0xff]  ;;  %v889_v25 = vld [vmem:[%s2514_s4 + $0x70] sm:$0xff] }
  0xde   :  { %638 = vmatpush.msra.mxu0 %v429_v36  ;;  %678 = vmatpush.msrb.mxu2 %v430_v6  ;;  %v904_v28 = vld [vmem:[%s2514_s4 + $0xe8] sm:$0xff] }
  0xdf   :  { %625 = vmatpush.msra.mxu3 %v291_v37  ;;  %665 = vmatpush.msra.mxu1 %v292_v38  ;;  %v1941_v38 = vld [vmem:[#allocation2 + $0x610] sm:$0xff] }
  0xe0   :  { %571 = vmatmul.f32.vlgmr.msrb.gmra.mxu0 %v1872_v19  ;;  %611 = vmatmul.f32.vlgmr.msra.gmra.mxu2 %v1872_v19 }
  0xe1   :  { %639 = vmatpush.msra.mxu0 %v423_v39  ;;  %679 = vmatpush.msrb.mxu2 %v424_v42  ;;  %v451_v39 = vperm.slane %v1941_v38, 0 }
  0xe2   :  { %626 = vmatpush.msra.mxu3 %v285_v47  ;;  %666 = vmatpush.msra.mxu1 %v286_v48  ;;  %v1944_v47 = vld [vmem:[#allocation2 + $0x618] sm:$0xff] }
  0xe3   :  { %640 = vmatpush.msra.mxu0 %v417_v44  ;;  %680 = vmatpush.msrb.mxu2 %v418_v49  ;;  %v452_v49 = vperm.slane %v1944_v47, 0 }
  0xe4   :  { %627 = vmatpush.msra.mxu3 %v279_v50  ;;  %667 = vmatpush.msra.mxu1 %v280_v51 }
  0xe5   :  { %641 = vmatpush.msra.mxu0 %v411_v43  ;;  %681 = vmatpush.msrb.mxu2 %v412_v14 }
  0xe6   :  { %628 = vmatpush.msra.mxu3 %v273_v54  ;;  %668 = vmatpush.msra.mxu1 %v274_v56  ;;  %v255_v54 = vld [vmem:[#allocation2 + $0x620] sm:$0xff] }
  0xe7   :  { %642 = vmatpush.msra.mxu0 %v405_v27  ;;  %682 = vmatpush.msrb.mxu2 %v406_v58  ;;  %v453_v56 = vperm.slane %v255_v54, 0 }
  0xe8   :  { %629 = vmatpush.msra.mxu3 %v267_v59  ;;  %669 = vmatpush.msra.mxu1 %v268_v22  ;;  %v1953_v22 = vld [vmem:[#allocation2 + $0x608] sm:$0xff] }
  0xe9   :  { %643 = vmatpush.msra.mxu0 %v399_v60  ;;  %683 = vmatpush.msrb.mxu2 %v400_v61  ;;  %v1955_v60 = vld [vmem:[#allocation2 + $0x600] sm:$0xff]  ;;  %v450_v61 = vperm.slane %v1953_v22, 0 }
  0xea   :  { %630 = vmatpush.msra.mxu3 %v261_v41  ;;  %670 = vmatpush.msra.mxu1 %v262_v63  ;;  %v449_v62 = vperm.slane %v1955_v60, 0 }
  0xeb   :  { %631 = vmatmul.f32.vlgmr.msra.gmra.mxu3 %v1861_v52  ;;  %644 = vmatpush.msra.mxu0 %v393_v1 }
  0xec   :  { %671 = vmatmul.f32.vlgmr.msra.gmra.mxu1 %v1861_v52  ;;  %684 = vmatpush.msrb.mxu2 %v394_v2  ;;  %v703_v52 = vld [vmem:[%s2513_s3 + $0x40] sm:$0xff] }
  0xed   :  { %723 = vmatpush.msrb.mxu3 %v709_v3  ;;  %645 = vmatpush.msra.mxu0 %v387_v33 }
  0xee   :  { %685 = vmatpush.msrb.mxu2 %v388_v5 }
  0xef   :  { %724 = vmatpush.msrb.mxu3 %v707_v8  ;;  %646 = vmatpush.msra.mxu0 %v381_v9  ;;  %v1669_v9 = vmov 256.0  }
  0xf0   :  { %686 = vmatpush.msrb.mxu2 %v382_v10  ;;  %1607 = vrcp.f32 %v1669_v9  ;;  %v891_v9 = vld [vmem:[%s2514_s4 + $0x80] sm:$0xff] }
  0xf1   :  { %725 = vmatpush.msrb.mxu3 %v705_v11  ;;  %647 = vmatpush.msra.mxu0 %v375_v12 }
  0xf2   :  { %687 = vmatpush.msrb.mxu2 %v376_v15 }
  0xf3   :  { %726 = vmatpush.msrb.mxu3 %v703_v52  ;;  %648 = vmatpush.msra.mxu0 %v369_v16 }
  0xf4   :  { %688 = vmatpush.msrb.mxu2 %v370_v17 }
  0xf5   :  { %727 = vmatpush.msrb.mxu3 %v701_v18  ;;  %649 = vmatpush.msra.mxu0 %v363_v20 }
  0xf6   :  { %689 = vmatpush.msrb.mxu2 %v364_v21  ;;  %v1608_v10 = vpop.eup %1607 }
  0xf7   :  { %728 = vmatpush.msrb.mxu3 %v699_v46  ;;  %650 = vmatpush.msra.mxu0 %v357_v23  ;;  %v759_v11 = vmul.f32 256.0, %v1608_v10  ;;  %vm763_vm1 = vweird.f32 %v1608_v10  ;;  %v890_v23 = vld [vmem:[%s2514_s4 + $0x78] sm:$0xff] }
  0xf8   :  { %690 = vmatpush.msrb.mxu2 %v358_v24  ;;  %651 = vmatmul.f32.vlgmr.msra.gmra.mxu0 %v1872_v19  ;;  %v906_v24 = vld [vmem:[%s2514_s4 + $0xf8] sm:$0xff] }
  0xf9   :  { %729 = vmatpush.msrb.mxu3 %v697_v26  ;;  %691 = vmatmul.f32.vlgmr.msrb.gmra.mxu2 %v1872_v19  ;;  %v704_v19 = vld [vmem:[%s2513_s3 + $0x48] sm:$0xff]  ;;  %v760_v12 = vsub.f32 1.0, %v759_v11  ;;  %v905_v26 = vld [vmem:[%s2514_s4 + $0xf0] sm:$0xff]  ;;  %v792_v11 = vperm.slane %v1953_v22, 2 }
  0xfa   :  { %743 = vmatpush.msrb.mxu0 %v710_v0  ;;  %908 = vmatpush.msrb.mxu1 %v890_v23  ;;  %v888_v0 = vld [vmem:[%s2514_s4 + $0x68] sm:$0xff] }
  0xfb   :  { %730 = vmatpush.msrb.mxu3 %v695_v29  ;;  %v761_v13 = vmul.f32 %v1608_v10, %v760_v12  ;;  %928 = vmatpush.msra.mxu2 %v906_v24  ;;  %v887_v29 = vld [vmem:[%s2514_s4 + $0x60] sm:$0xff]  ;;  %v791_v12 = vperm.slane %v1955_v60, 2 }
  0xfc   :  { %1488 = vmatmul.msk.f32.vlgmr.msrb.gmra.mxu3 %vm711_vm0, %v1917_v31  ;;  %744 = vmatpush.msrb.mxu0 %v708_v30  ;;  %v903_v30 = vld [vmem:[%s2514_s4 + $0xe0] sm:$0xff] }
  0xfd   :  { %v762_v15 = vadd.f32 %v1608_v10, %v761_v13  ;;  %909 = vmatpush.msrb.mxu1 %v889_v25  ;;  %929 = vmatpush.msra.mxu2 %v905_v26 }
  0xfe   :  { %745 = vmatpush.msrb.mxu0 %v706_v40  ;;  %v886_v40 = vld [vmem:[%s2514_s4 + $0x58] sm:$0xff] }
  0xff   :  { %v1959_v52 = vsel %vm763_vm1, %v1608_v10, %v762_v15  ;;  %910 = vmatpush.msrb.mxu1 %v888_v0  ;;  %930 = vmatpush.msra.mxu2 %v904_v28 }
 0x100   :  { %746 = vmatpush.msrb.mxu0 %v704_v19  ;;  %v902_v19 = vld [vmem:[%s2514_s4 + $0xd8] sm:$0xff] }
 0x101   :  { %911 = vmatpush.msrb.mxu1 %v887_v29  ;;  %931 = vmatpush.msra.mxu2 %v903_v30 }
 0x102   :  { %747 = vmatpush.msrb.mxu0 %v702_v32 }
 0x103   :  { %912 = vmatpush.msrb.mxu1 %v886_v40  ;;  %932 = vmatpush.msra.mxu2 %v902_v19 }
 0x104   :  { %748 = vmatpush.msrb.mxu0 %v700_v55 }
 0x106   :  { %749 = vmatpush.msrb.mxu0 %v698_v34  ;;  %v885_v34 = vld [vmem:[%s2514_s4 + $0x50] sm:$0xff] }
 0x107   :  { %913 = vmatpush.msrb.mxu1 %v885_v34 }
 0x108   :  { %750 = vmatpush.msrb.mxu0 %v696_v35  ;;  %v901_v35 = vld [vmem:[%s2514_s4 + $0xd0] sm:$0xff] }
 0x109   :  { %1489 = vmatmul.msk.f32.vlgmr.msrb.gmra.mxu0 %vm711_vm0, %v1917_v31  ;;  %933 = vmatpush.msra.mxu2 %v901_v35 }
 0x146   :  { %v512_v37 = vpop.f32.mrf.mxu1 }
 0x147   :  { %v513_v41 = vadd.f32 %v512_v37, %v450_v61  ;;  %v900_v37 = vld [vmem:[%s2514_s4 + $0xc8] sm:$0xff]  ;;  %v894_v61 = vld [vmem:[%s2514_s4 + $0x98] sm:$0xff] }
 0x148   :  { %934 = vmatpush.msra.mxu2 %v900_v37 }
 0x14c   :  { %v472_v36 = vpop.f32.mrf.mxu3 }
 0x14d   :  { %v473_v63 = vadd.f32 %v472_v36, %v449_v62 }
 0x14e   :  { %v592_v51 = vpop.f32.mrf.mxu1 }
 0x14f   :  { %v593_v43 = vadd.f32 %v592_v51, %v452_v49  ;;  %v897_v49 = vld [vmem:[%s2514_s4 + $0xb0] sm:$0xff] }
 0x154   :  { %v492_v6 = vpop.f32.mrf.mxu0  ;;  %v552_v42 = vpop.f32.mrf.mxu3 }
 0x155   :  { %v553_v48 = vadd.f32 %v552_v42, %v451_v39  ;;  %v493_v2 = vadd.f32 %v492_v6, %v473_v63  ;;  %v884_v6 = vld [vmem:[%s2514_s4 + $0x48] sm:$0xff]  ;;  %v883_v39 = vld [vmem:[%s2514_s4 + $0x40] sm:$0xff]  ;;  %v893_v63 = vld [vmem:[%s2514_s4 + $0x90] sm:$0xff] }
 0x156   :  { %v899_v42 = vld [vmem:[%s2514_s4 + $0xc0] sm:$0xff]  ;;  %914 = vmatpush.msrb.mxu1 %v884_v6 }
 0x157   :  { %935 = vmatpush.msra.mxu2 %v899_v42 }
 0x158   :  { %915 = vmatpush.msrb.mxu1 %v883_v39 }
 0x15a   :  { %v532_v45 = vpop.f32.mrf.mxu2 }
 0x15b   :  { %v533_v3 = vadd.f32 %v532_v45, %v513_v41  ;;  %v882_v45 = vld [vmem:[%s2514_s4 + $0x38] sm:$0xff]  ;;  %v877_v41 = vld [vmem:[%s2514_s4 + $0x10] sm:$0xff] }
 0x15c   :  { %916 = vmatpush.msrb.mxu1 %v882_v45  ;;  %v1494_v45 = vld [vmem:[%s2513_s3 + $0xa0] sm:$0xff] }
 0x15d   :  { %v572_v44 = vpop.f32.mrf.mxu0 }
 0x15e   :  { %v1947_v50 = vadd.f32 %v572_v44, %v553_v48  ;;  %v898_v48 = vld [vmem:[%s2514_s4 + $0xb8] sm:$0xff]  ;;  %v881_v44 = vld [vmem:[%s2514_s4 + $0x30] sm:$0xff] }
 0x15f   :  { %936 = vmatpush.msra.mxu2 %v898_v48  ;;  %917 = vmatpush.msrb.mxu1 %v881_v44 }
 0x161   :  { %937 = vmatpush.msra.mxu2 %v897_v49  ;;  %v1504_v49 = vld [vmem:[%s2513_s3 + $0xf0] sm:$0xff] }
 0x162   :  { %977 = vmatpush.msra.mxu3 %v1504_v49  ;;  %v1493_v49 = vld [vmem:[%s2513_s3 + $0x98] sm:$0xff] }
 0x163   :  { %v612_v14 = vpop.f32.mrf.mxu2 }
 0x164   :  { %v1949_v53 = vadd.f32 %v612_v14, %v593_v43  ;;  %v880_v43 = vld [vmem:[%s2514_s4 + $0x28] sm:$0xff] }
 0x165   :  { %v896_v14 = vld [vmem:[%s2514_s4 + $0xa8] sm:$0xff]  ;;  %918 = vmatpush.msrb.mxu1 %v880_v43  ;;  %v1502_v43 = vld [vmem:[%s2513_s3 + $0xe0] sm:$0xff] }
 0x166   :  { %938 = vmatpush.msra.mxu2 %v896_v14  ;;  %978 = vmatpush.msra.mxu3 %v1502_v43  ;;  %v1491_v43 = vld [vmem:[%s2513_s3 + $0x88] sm:$0xff] }
 0x16e   :  { %v632_v57 = vpop.f32.mrf.mxu3 }
 0x16f   :  { %v633_v27 = vadd.f32 %v632_v57, %v453_v56  ;;  %v879_v56 = vld [vmem:[%s2514_s4 + $0x20] sm:$0xff] }
 0x170   :  { %v895_v57 = vld [vmem:[%s2514_s4 + $0xa0] sm:$0xff]  ;;  %919 = vmatpush.msrb.mxu1 %v879_v56 }
 0x171   :  { %939 = vmatpush.msra.mxu2 %v895_v57  ;;  %v1503_v57 = vld [vmem:[%s2513_s3 + $0xe8] sm:$0xff] }
 0x173   :  { %940 = vmatpush.msra.mxu2 %v894_v61 }
 0x175   :  { %v652_v58 = vpop.f32.mrf.mxu0  ;;  %941 = vmatpush.msra.mxu2 %v893_v63 }
 0x176   :  { %v1951_v59 = vadd.f32 %v652_v58, %v633_v27  ;;  %v878_v58 = vld [vmem:[%s2514_s4 + $0x18] sm:$0xff] }
 0x177   :  { %920 = vmatpush.msrb.mxu1 %v878_v58 }
 0x179   :  { %921 = vmatpush.msrb.mxu1 %v877_v41 }
 0x17f   :  { %v732_v1 = vpop.f32.mrf.mxu3 }
 0x180   :  { %v733_v4 = vadd.f32 %v732_v1, %v493_v2  ;;  %v876_v2 = vld [vmem:[%s2514_s4 + $0x8] sm:$0xff] }
 0x181   :  { %922 = vmatpush.msrb.mxu1 %v876_v2 }
 0x186   :  { %v752_v33 = vpop.f32.mrf.mxu0 }
 0x187   :  { %v753_v5 = vadd.f32 %v752_v33, %v533_v3  ;;  %v892_v3 = vld [vmem:[%s2514_s4 + $0x88] sm:$0xff] }
 0x188   :  { %942 = vmatpush.msra.mxu2 %v892_v3 }
 0x189   :  { %v755_v8 = vadd.f32 %v753_v5, %v733_v4 }
 0x18a   :  { %943 = vmatpush.msra.mxu2 %v891_v9 }
 0x18b   :  { %756 = vadd.xlane.f32.xlu0 %v755_v8  ;;  %v875_v8 = vld [vmem:[%s2514_s4] sm:$0xff] }
 0x18c   :  { %923 = vmatpush.msrb.mxu1 %v875_v8 }
 0x1fe   :  { %v757_v16 = vpop.xlane.xlu0 %756 }
 0x1ff   :  { %v765_v17 = vmul.f32 %v1959_v52, %v757_v16 }
 0x201   :  { %v1962_v18 = vsub.f32 %v733_v4, %v765_v17  ;;  %v1964_v20 = vsub.f32 %v753_v5, %v765_v17  ;;  %v788_v4 = vperm.slane %v1953_v22, 1  ;;  %v787_v5 = vperm.slane %v1955_v60, 1 }
 0x203   :  { %v768_v7 = vmul.f32 %v1962_v18, %v1962_v18  ;;  %v769_v21 = vmul.f32 %v1964_v20, %v1964_v20 }
 0x205   :  { %v770_v46 = vadd.f32 %v769_v21, %v768_v7 }
 0x207   :  { %771 = vadd.xlane.f32.xlu0 %v770_v46 }
 0x27a   :  { %v772_v32 = vpop.xlane.xlu0 %771 }
 0x27b   :  { %v773_v55 = vmul.f32 %v772_v32, %v1959_v52 }
 0x27d   :  { %v774_v36 = vadd.f32 1e-05, %v773_v55 }
 0x27f   :  { %1609 = vrsqrt.f32 %v774_v36  ;;  %vm781_vm3 = vweird.f32 %v774_v36 }
 0x285   :  { %v1610_v51 = vpop.eup %1609 }
 0x286   :  { %v776_v54 = vmul.f32 %v1610_v51, %v774_v36  ;;  %vm782_vm2 = vweird.f32 %v1610_v51 }
 0x287   :  { %vm783_vm4 = vmor %vm781_vm3, %vm782_vm2 }
 0x288   :  { %v777_v27 = vmul.f32 %v1610_v51, %v776_v54 }
 0x28a   :  { %v778_v62 = vmul.f32 0.5, %v777_v27 }
 0x28c   :  { %v779_v1 = vsub.f32 1.5, %v778_v62 }
 0x28e   :  { %v780_v33 = vmul.f32 %v1610_v51, %v779_v1 }
 0x290   :  { %v784_v10 = vsel %vm783_vm4, %v1610_v51, %v780_v33  ;;  %v1505_v51 = vld [vmem:[%s2513_s3 + $0xf8] sm:$0xff] }
 0x291   :  { %v785_v13 = vmul.f32 %v784_v10, %v1962_v18  ;;  %v786_v15 = vmul.f32 %v784_v10, %v1964_v20  ;;  %997 = vmatpush.msra.mxu0 %v1505_v51  ;;  %v1490_v51 = vld [vmem:[%s2513_s3 + $0x80] sm:$0xff] }
 0x293   :  { %v789_v16 = vmul.f32 %v787_v5, %v785_v13  ;;  %v790_v17 = vmul.f32 %v788_v4, %v786_v15  ;;  %998 = vmatpush.msra.mxu0 %v1503_v57 }
 0x295   :  { %v2073_v7 = vadd.f32 %v791_v12, %v789_v16  ;;  %v2075_v21 = vadd.f32 %v792_v11, %v790_v17 }
 0x297   :  { %v2078_v46 = vmul.f32 0.70710677, %v2073_v7  ;;  %v2081_v23 = vmul.f32 0.70710677, %v2075_v21 }
 0x299   :  { %v799_v22 = vand.u32 2147483647, %v2078_v46  ;;  %v800_v18 = vand.u32 2147483647, %v2081_v23  ;;  %vm865_vm13 = vcmp.ge.f32.partialorder %v2078_v46, 0.0  ;;  %vm866_vm14 = vcmp.ge.f32.partialorder %v2081_v23, 0.0 }
 0x29a   :  { %v1501_v46 = vld [vmem:[%s2513_s3 + $0xd8] sm:$0xff]  ;;  %v1496_v23 = vld [vmem:[%s2513_s3 + $0xb0] sm:$0xff] }
 0x29b   :  { %v801_v24 = vmul.f32 0.3275911, %v799_v22  ;;  %v802_v20 = vmul.f32 0.3275911, %v800_v18  ;;  %v853_v54 = vsub.f32 0.0, %v799_v22  ;;  %v854_v61 = vsub.f32 0.0, %v800_v18  ;;  %999 = vmatpush.msra.mxu0 %v1501_v46 }
 0x29d   :  { %v803_v25 = vadd.f32 1.0, %v801_v24  ;;  %v804_v26 = vadd.f32 1.0, %v802_v20  ;;  %v855_v63 = vmul.f32 %v853_v54, %v799_v22  ;;  %v856_v3 = vmul.f32 %v854_v61, %v800_v18  ;;  %v2145_v54 = vpop.f32.mrf.mxu2 }
 0x29f   :  { %1611 = vrcp.f32 %v803_v25  ;;  %v816_v19 = vand.u32 2147483648, %v803_v25  ;;  %v814_v34 = vand.u32 2147483647, %v803_v25  ;;  %v831_v35 = vand.u32 2147483648, %v804_v26 }
 0x2a0   :  { %1613 = vrcp.f32 %v804_v26  ;;  %vm810_vm7 = vweird.f32 %v803_v25  ;;  %v829_v6 = vand.u32 2147483647, %v804_v26  ;;  %vm825_vm9 = vweird.f32 %v804_v26 }
 0x2a1   :  { %v817_v39 = vor.u32 1.1754944e-38, %v816_v19  ;;  %vm815_vm11 = vcmp.eq.f32.partialorder %v814_v34, 8.507059e+37  ;;  %v832_v44 = vor.u32 1.1754944e-38, %v831_v35  ;;  %v857_v5 = vmul.f32 1.442695, %v855_v63 }
 0x2a2   :  { %vm830_vm12 = vcmp.eq.f32.partialorder %v829_v6, 8.507059e+37  ;;  %v859_v10 = vmul.f32 1.442695, %v856_v3  ;;  %v796_v35 = vmul.f32 0.5, %v2075_v21  ;;  %v1499_v21 = vld [vmem:[%s2513_s3 + $0xc8] sm:$0xff] }
 0x2a3   :  { %1615 = vpow2.f32 %v857_v5  ;;  %1000 = vmatpush.msra.mxu0 %v1499_v21  ;;  %v1527_v21 = vld [vmem:[%s2514_s4 + $0x198] sm:$0xff] }
 0x2a4   :  { %1617 = vpow2.f32 %v859_v10  ;;  %v1522_v10 = vld [vmem:[%s2514_s4 + $0x170] sm:$0xff] }
 0x2a5   :  { %v1612_v0 = vpop.eup %1611 }
 0x2a6   :  { %v1614_v28 = vpop.eup %1613  ;;  %v806_v29 = vmul.f32 %v1612_v0, %v803_v25  ;;  %vm811_vm5 = vweird.f32 %v1612_v0 }
 0x2a7   :  { %v821_v30 = vmul.f32 %v1614_v28, %v804_v26  ;;  %vm826_vm6 = vweird.f32 %v1614_v28  ;;  %vm812_vm8 = vmor %vm810_vm7, %vm811_vm5 }
 0x2a8   :  { %v807_v40 = vsub.f32 1.0, %v806_v29  ;;  %vm2085_vm10 = vmor %vm825_vm9, %vm826_vm6 }
 0x2a9   :  { %v822_v32 = vsub.f32 1.0, %v821_v30  ;;  %v1616_v22 = vpop.eup %1615 }
 0x2aa   :  { %v808_v55 = vmul.f32 %v1612_v0, %v807_v40  ;;  %v1618_v26 = vpop.eup %1617 }
 0x2ab   :  { %v823_v36 = vmul.f32 %v1614_v28, %v822_v32  ;;  %v795_v32 = vmul.f32 0.5, %v2073_v7  ;;  %v1498_v7 = vld [vmem:[%s2513_s3 + $0xc0] sm:$0xff] }
 0x2ac   :  { %v809_v37 = vadd.f32 %v1612_v0, %v808_v55 }
 0x2ad   :  { %v824_v42 = vadd.f32 %v1614_v28, %v823_v36 }
 0x2ae   :  { %v813_v48 = vsel %vm812_vm8, %v1612_v0, %v809_v37 }
 0x2af   :  { %v818_v14 = vsel %vm815_vm11, %v817_v39, %v813_v48  ;;  %v828_v56 = vsel %vm2085_vm10, %v1614_v28, %v824_v42  ;;  %v1500_v39 = vld [vmem:[%s2513_s3 + $0xd0] sm:$0xff]  ;;  %v1497_v42 = vld [vmem:[%s2513_s3 + $0xb8] sm:$0xff]  ;;  %v1495_v48 = vld [vmem:[%s2513_s3 + $0xa8] sm:$0xff] }
 0x2b0   :  { %v835_v27 = vmul.f32 1.0614054, %v818_v14  ;;  %v833_v58 = vsel %vm830_vm12, %v832_v44, %v828_v56  ;;  %979 = vmatpush.msra.mxu3 %v1500_v39  ;;  %1001 = vmatpush.msra.mxu0 %v1497_v42  ;;  %v1492_v44 = vld [vmem:[%s2513_s3 + $0x90] sm:$0xff]  ;;  %v907_v56 = vperm.slane %v1955_v60, 3  ;;  %v1528_v39 = vld [vmem:[%s2514_s4 + $0x1a0] sm:$0xff] }
 0x2b1   :  { %v836_v62 = vmul.f32 1.0614054, %v833_v58  ;;  %v1510_v42 = vld [vmem:[%s2514_s4 + $0x110] sm:$0xff] }
 0x2b2   :  { %v837_v41 = vadd.f32 -1.4531521, %v835_v27  ;;  %980 = vmatpush.msra.mxu3 %v1498_v7  ;;  %1002 = vmatpush.msra.mxu0 %v1495_v48  ;;  %v1511_v7 = vld [vmem:[%s2514_s4 + $0x118] sm:$0xff] }
 0x2b3   :  { %v838_v1 = vadd.f32 -1.4531521, %v836_v62 }
 0x2b4   :  { %v839_v2 = vmul.f32 %v837_v41, %v818_v14  ;;  %981 = vmatpush.msra.mxu3 %v1496_v23  ;;  %1003 = vmatpush.msra.mxu0 %v1493_v49  ;;  %v1525_v49 = vld [vmem:[%s2514_s4 + $0x188] sm:$0xff] }
 0x2b5   :  { %v840_v33 = vmul.f32 %v838_v1, %v833_v58 }
 0x2b6   :  { %v841_v4 = vadd.f32 1.4214138, %v839_v2  ;;  %982 = vmatpush.msra.mxu3 %v1494_v45  ;;  %1004 = vmatpush.msra.mxu0 %v1491_v43  ;;  %v1526_v45 = vld [vmem:[%s2514_s4 + $0x190] sm:$0xff]  ;;  %v1035_v43 = vperm.slane %v1944_v47, 1 }
 0x2b7   :  { %v842_v8 = vadd.f32 1.4214138, %v840_v33 }
 0x2b8   :  { %v843_v9 = vmul.f32 %v841_v4, %v818_v14  ;;  %983 = vmatpush.msra.mxu3 %v1492_v44  ;;  %v1509_v44 = vld [vmem:[%s2514_s4 + $0x108] sm:$0xff] }
 0x2b9   :  { %v844_v11 = vmul.f32 %v842_v8, %v833_v58 }
 0x2ba   :  { %v845_v12 = vadd.f32 -0.28449672, %v843_v9  ;;  %984 = vmatpush.msra.mxu3 %v1490_v51 }
 0x2bb   :  { %v846_v13 = vadd.f32 -0.28449672, %v844_v11  ;;  %v1538_v11 = vld [vmem:[%s2514_s4 + $0x1f0] sm:$0xff] }
 0x2bc   :  { %v847_v15 = vmul.f32 %v845_v12, %v818_v14  ;;  %v1521_v12 = vld [vmem:[%s2514_s4 + $0x168] sm:$0xff] }
 0x2bd   :  { %v848_v16 = vmul.f32 %v846_v13, %v833_v58  ;;  %v1537_v13 = vld [vmem:[%s2514_s4 + $0x1e8] sm:$0xff] }
 0x2be   :  { %v849_v17 = vadd.f32 0.2548296, %v847_v15  ;;  %v1520_v15 = vld [vmem:[%s2514_s4 + $0x160] sm:$0xff] }
 0x2bf   :  { %v850_v24 = vadd.f32 0.2548296, %v848_v16  ;;  %v1536_v16 = vld [vmem:[%s2514_s4 + $0x1e0] sm:$0xff] }
 0x2c0   :  { %v851_v20 = vmul.f32 %v849_v17, %v818_v14  ;;  %v2143_v14 = vpop.f32.mrf.mxu1  ;;  %v1519_v17 = vld [vmem:[%s2514_s4 + $0x158] sm:$0xff] }
 0x2c1   :  { %v852_v25 = vmul.f32 %v850_v24, %v833_v58  ;;  %v1535_v24 = vld [vmem:[%s2514_s4 + $0x1d8] sm:$0xff] }
 0x2c2   :  { %v861_v18 = vmul.f32 %v1616_v22, %v851_v20 }
 0x2c3   :  { %v862_v0 = vmul.f32 %v1618_v26, %v852_v25  ;;  %v1518_v25 = vld [vmem:[%s2514_s4 + $0x150] sm:$0xff] }
 0x2c4   :  { %v863_v28 = vsub.f32 1.0, %v861_v18  ;;  %v1534_v26 = vld [vmem:[%s2514_s4 + $0x1d0] sm:$0xff] }
 0x2c5   :  { %v864_v29 = vsub.f32 1.0, %v862_v0  ;;  %v1517_v0 = vld [vmem:[%s2514_s4 + $0x148] sm:$0xff] }
 0x2c6   :  { %v867_v30 = vsub.f32 0.0, %v863_v28 }
 0x2c7   :  { %v868_v40 = vsub.f32 0.0, %v864_v29 }
 0x2c8   :  { %v869_v19 = vsel %vm865_vm13, %v863_v28, %v867_v30  ;;  %v1533_v28 = vld [vmem:[%s2514_s4 + $0x1c8] sm:$0xff]  ;;  %v1532_v30 = vld [vmem:[%s2514_s4 + $0x1c0] sm:$0xff] }
 0x2c9   :  { %v871_v55 = vadd.f32 1.0, %v869_v19  ;;  %v870_v34 = vsel %vm866_vm14, %v864_v29, %v868_v40  ;;  %v1516_v29 = vld [vmem:[%s2514_s4 + $0x140] sm:$0xff]  ;;  %v1515_v40 = vld [vmem:[%s2514_s4 + $0x138] sm:$0xff] }
 0x2ca   :  { %v872_v36 = vadd.f32 1.0, %v870_v34  ;;  %v1531_v19 = vld [vmem:[%s2514_s4 + $0x1b8] sm:$0xff] }
 0x2cb   :  { %v873_v6 = vmul.f32 %v871_v55, %v795_v32  ;;  %v1514_v32 = vld [vmem:[%s2514_s4 + $0x130] sm:$0xff] }
 0x2cc   :  { %v874_v37 = vmul.f32 %v872_v36, %v796_v35  ;;  %v1530_v55 = vld [vmem:[%s2514_s4 + $0x1b0] sm:$0xff]  ;;  %v1513_v35 = vld [vmem:[%s2514_s4 + $0x128] sm:$0xff] }
 0x2cd   :  { %924 = vmatmul.f32.vlgmr.msrb.gmra.mxu1 %v873_v6  ;;  %v1529_v36 = vld [vmem:[%s2514_s4 + $0x1a8] sm:$0xff] }
 0x2ce   :  { %944 = vmatmul.f32.vlgmr.msra.gmra.mxu2 %v874_v37  ;;  %v1512_v37 = vld [vmem:[%s2514_s4 + $0x120] sm:$0xff] }
 0x34a   :  { %v925_v57 = vpop.f32.mrf.mxu1 }
 0x34b   :  { %v926_v27 = vadd.f32 %v925_v57, %v907_v56  ;;  %v1034_v56 = vperm.slane %v1941_v38, 1  ;;  %v1508_v57 = vld [vmem:[%s2514_s4 + $0x100] sm:$0xff] }
 0x351   :  { %v945_v58 = vpop.f32.mrf.mxu2 }
 0x352   :  { %v946_v61 = vadd.f32 %v945_v58, %v926_v27  ;;  %v1524_v27 = vld [vmem:[%s2514_s4 + $0x180] sm:$0xff] }
 0x354   :  { %v2149_v62 = vadd.f32 %v946_v61, %v1917_v31  ;;  %v1039_v61 = vperm.slane %v1944_v47, 2 }
 0x356   :  { %1506 = vmatmul.msk.f32.vlgmr.msra.gmra.mxu3 %vm711_vm0, %v2149_v62  ;;  %1507 = vmatmul.msk.f32.vlgmr.msra.gmra.mxu0 %vm711_vm0, %v2149_v62 }
 0x3d3   :  { %v1006_v41 = vpop.f32.mrf.mxu0 }
 0x3d4   :  { %v1007_v1 = vadd.f32 %v1006_v41, %v1949_v53  ;;  %v1539_v53 = vld [vmem:[%s2514_s4 + $0x1f8] sm:$0xff]  ;;  %v1038_v41 = vperm.slane %v1941_v38, 2 }
 0x3d5   :  { %1176 = vmatpush.msrb.mxu0 %v1539_v53 }
 0x3d7   :  { %1177 = vmatpush.msrb.mxu0 %v1538_v11 }
 0x3d9   :  { %v986_v63 = vpop.f32.mrf.mxu3  ;;  %1178 = vmatpush.msrb.mxu0 %v1537_v13 }
 0x3da   :  { %v987_v2 = vadd.f32 %v986_v63, %v1947_v50  ;;  %v1523_v50 = vld [vmem:[%s2514_s4 + $0x178] sm:$0xff] }
 0x3db   :  { %1156 = vmatpush.msrb.mxu3 %v1523_v50  ;;  %1179 = vmatpush.msrb.mxu0 %v1536_v16 }
 0x3dc   :  { %v1009_v60 = vadd.f32 %v1007_v1, %v987_v2 }
 0x3dd   :  { %1157 = vmatpush.msrb.mxu3 %v1522_v10  ;;  %1180 = vmatpush.msrb.mxu0 %v1535_v24 }
 0x3de   :  { %1010 = vadd.xlane.f32.xlu1 %v1009_v60 }
 0x3df   :  { %1158 = vmatpush.msrb.mxu3 %v1521_v12  ;;  %1181 = vmatpush.msrb.mxu0 %v1534_v26 }
 0x3e1   :  { %1159 = vmatpush.msrb.mxu3 %v1520_v15  ;;  %1182 = vmatpush.msrb.mxu0 %v1533_v28 }
 0x3e3   :  { %1160 = vmatpush.msrb.mxu3 %v1519_v17  ;;  %1183 = vmatpush.msrb.mxu0 %v1532_v30 }
 0x3e5   :  { %1161 = vmatpush.msrb.mxu3 %v1518_v25  ;;  %1184 = vmatpush.msrb.mxu0 %v1531_v19  ;;  %v1555_v19 = vld [vmem:[%s2513_s3 + $0x178] sm:$0xff] }
 0x3e6   :  { %1245 = vmatpush.msrb.mxu2 %v1555_v19  ;;  %v1155_v19 = vperm.slane %v1941_v38, 3 }
 0x3e7   :  { %1162 = vmatpush.msrb.mxu3 %v1517_v0  ;;  %1185 = vmatpush.msrb.mxu0 %v1530_v55 }
 0x3e9   :  { %1163 = vmatpush.msrb.mxu3 %v1516_v29  ;;  %1186 = vmatpush.msrb.mxu0 %v1529_v36 }
 0x3eb   :  { %1164 = vmatpush.msrb.mxu3 %v1515_v40  ;;  %1187 = vmatpush.msrb.mxu0 %v1528_v39  ;;  %v1554_v40 = vld [vmem:[%s2513_s3 + $0x170] sm:$0xff] }
 0x3ec   :  { %1225 = vmatpush.msra.mxu1 %v1554_v40  ;;  %v1541_v40 = vld [vmem:[%s2513_s3 + $0x108] sm:$0xff] }
 0x3ed   :  { %1165 = vmatpush.msrb.mxu3 %v1514_v32  ;;  %1188 = vmatpush.msrb.mxu0 %v1527_v21 }
 0x3ef   :  { %1166 = vmatpush.msrb.mxu3 %v1513_v35  ;;  %1189 = vmatpush.msrb.mxu0 %v1526_v45 }
 0x3f1   :  { %1167 = vmatpush.msrb.mxu3 %v1512_v37  ;;  %1190 = vmatpush.msrb.mxu0 %v1525_v49 }
 0x3f3   :  { %1168 = vmatpush.msrb.mxu3 %v1511_v7  ;;  %1191 = vmatpush.msrb.mxu0 %v1524_v27 }
 0x3f5   :  { %1169 = vmatpush.msrb.mxu3 %v1510_v42 }
 0x3f7   :  { %1170 = vmatpush.msrb.mxu3 %v1509_v44 }
 0x3f9   :  { %1171 = vmatpush.msrb.mxu3 %v1508_v57 }
 0x451   :  { %v1011_v3 = vpop.xlane.xlu1 %1010 }
 0x452   :  { %v1012_v33 = vmul.f32 %v1011_v3, %v1959_v52 }
 0x454   :  { %v2158_v4 = vsub.f32 %v987_v2, %v1012_v33  ;;  %v2160_v31 = vsub.f32 %v1007_v1, %v1012_v33 }
 0x456   :  { %v1015_v5 = vmul.f32 %v2158_v4, %v2158_v4  ;;  %v1016_v8 = vmul.f32 %v2160_v31, %v2160_v31 }
 0x458   :  { %v1017_v9 = vadd.f32 %v1016_v8, %v1015_v5 }
 0x45a   :  { %1018 = vadd.xlane.f32.xlu1 %v1017_v9 }
 0x4cd   :  { %v1019_v20 = vpop.xlane.xlu1 %1018 }
 0x4ce   :  { %v1020_v22 = vmul.f32 %v1019_v20, %v1959_v52 }
 0x4d0   :  { %v1021_v18 = vadd.f32 1e-05, %v1020_v22 }
 0x4d2   :  { %1619 = vrsqrt.f32 %v1021_v18  ;;  %vm1028_vm1 = vweird.f32 %v1021_v18 }
 0x4d8   :  { %v1620_v34 = vpop.eup %1619 }
 0x4d9   :  { %v1023_v6 = vmul.f32 %v1620_v34, %v1021_v18  ;;  %vm1029_vm15 = vweird.f32 %v1620_v34 }
 0x4da   :  { %vm1030_vm2 = vmor %vm1028_vm1, %vm1029_vm15 }
 0x4db   :  { %v1024_v46 = vmul.f32 %v1620_v34, %v1023_v6 }
 0x4dd   :  { %v1025_v23 = vmul.f32 0.5, %v1024_v46 }
 0x4df   :  { %v1026_v48 = vsub.f32 1.5, %v1025_v23 }
 0x4e1   :  { %v1027_v51 = vmul.f32 %v1620_v34, %v1026_v48 }
 0x4e3   :  { %v1031_v58 = vsel %vm1030_vm2, %v1620_v34, %v1027_v51 }
 0x4e4   :  { %v1032_v63 = vmul.f32 %v1031_v58, %v2158_v4  ;;  %v1033_v1 = vmul.f32 %v1031_v58, %v2160_v31 }
 0x4e6   :  { %v1036_v2 = vmul.f32 %v1034_v56, %v1032_v63  ;;  %v1037_v60 = vmul.f32 %v1035_v43, %v1033_v1 }
 0x4e8   :  { %v2269_v3 = vadd.f32 %v1038_v41, %v1036_v2  ;;  %v2271_v33 = vadd.f32 %v1039_v61, %v1037_v60 }
 0x4ea   :  { %v2274_v5 = vmul.f32 0.70710677, %v2269_v3  ;;  %v2277_v8 = vmul.f32 0.70710677, %v2271_v33 }
 0x4ec   :  { %v1046_v47 = vand.u32 2147483647, %v2274_v5  ;;  %v1047_v4 = vand.u32 2147483647, %v2277_v8  ;;  %vm1112_vm11 = vcmp.ge.f32.partialorder %v2274_v5, 0.0  ;;  %vm1113_vm12 = vcmp.ge.f32.partialorder %v2277_v8, 0.0 }
 0x4ed   :  { %v1553_v5 = vld [vmem:[%s2513_s3 + $0x168] sm:$0xff]  ;;  %v1548_v8 = vld [vmem:[%s2513_s3 + $0x140] sm:$0xff] }
 0x4ee   :  { %v1048_v9 = vmul.f32 0.3275911, %v1046_v47  ;;  %v1049_v31 = vmul.f32 0.3275911, %v1047_v4  ;;  %v1100_v55 = vsub.f32 0.0, %v1046_v47  ;;  %v1101_v6 = vsub.f32 0.0, %v1047_v4  ;;  %1246 = vmatpush.msrb.mxu2 %v1553_v5 }
 0x4f0   :  { %v1050_v50 = vadd.f32 1.0, %v1048_v9  ;;  %v1051_v53 = vadd.f32 1.0, %v1049_v31  ;;  %v1102_v46 = vmul.f32 %v1100_v55, %v1046_v47  ;;  %v1103_v23 = vmul.f32 %v1101_v6, %v1047_v4  ;;  %v2341_v6 = vld [vmem:[#allocation2 + $0x628] sm:$0xff] }
 0x4f2   :  { %1621 = vrcp.f32 %v1050_v50  ;;  %v1063_v16 = vand.u32 2147483648, %v1050_v50  ;;  %v1061_v20 = vand.u32 2147483647, %v1050_v50  ;;  %v1078_v22 = vand.u32 2147483648, %v1051_v53 }
 0x4f3   :  { %1623 = vrcp.f32 %v1051_v53  ;;  %v1076_v26 = vand.u32 2147483647, %v1051_v53  ;;  %vm1057_vm5 = vweird.f32 %v1050_v50  ;;  %vm1072_vm7 = vweird.f32 %v1051_v53 }
 0x4f4   :  { %v1064_v0 = vor.u32 1.1754944e-38, %v1063_v16  ;;  %vm1062_vm8 = vcmp.eq.f32.partialorder %v1061_v20, 8.507059e+37  ;;  %v1079_v30 = vor.u32 1.1754944e-38, %v1078_v22  ;;  %v1104_v48 = vmul.f32 1.442695, %v1102_v46  ;;  %v1552_v20 = vld [vmem:[%s2513_s3 + $0x160] sm:$0xff] }
 0x4f5   :  { %vm1077_vm10 = vcmp.eq.f32.partialorder %v1076_v26, 8.507059e+37  ;;  %v1106_v51 = vmul.f32 1.442695, %v1103_v23  ;;  %1226 = vmatpush.msra.mxu1 %v1552_v20  ;;  %v1549_v22 = vld [vmem:[%s2513_s3 + $0x148] sm:$0xff]  ;;  %v1547_v26 = vld [vmem:[%s2513_s3 + $0x138] sm:$0xff]  ;;  %v1578_v20 = vld [vmem:[%s2514_s4 + $0x2a0] sm:$0xff] }
 0x4f6   :  { %1625 = vpow2.f32 %v1104_v48 }
 0x4f7   :  { %1627 = vpow2.f32 %v1106_v51  ;;  %v1589_v51 = vld [vmem:[%s2514_s4 + $0x2f8] sm:$0xff] }
 0x4f8   :  { %v1622_v10 = vpop.eup %1621 }
 0x4f9   :  { %v1624_v11 = vpop.eup %1623  ;;  %v1053_v12 = vmul.f32 %v1622_v10, %v1050_v50  ;;  %vm1058_vm3 = vweird.f32 %v1622_v10 }
 0x4fa   :  { %v1068_v13 = vmul.f32 %v1624_v11, %v1051_v53  ;;  %vm1073_vm4 = vweird.f32 %v1624_v11  ;;  %vm1059_vm6 = vmor %vm1057_vm5, %vm1058_vm3 }
 0x4fb   :  { %v1054_v15 = vsub.f32 1.0, %v1053_v12  ;;  %vm1074_vm9 = vmor %vm1072_vm7, %vm1073_vm4 }
 0x4fc   :  { %v1069_v17 = vsub.f32 1.0, %v1068_v13  ;;  %v1626_v1 = vpop.eup %1625 }
 0x4fd   :  { %v1055_v24 = vmul.f32 %v1622_v10, %v1054_v15  ;;  %v1628_v60 = vpop.eup %1627  ;;  %v1043_v15 = vmul.f32 0.5, %v2271_v33  ;;  %v1551_v33 = vld [vmem:[%s2513_s3 + $0x158] sm:$0xff] }
 0x4fe   :  { %v1070_v25 = vmul.f32 %v1624_v11, %v1069_v17  ;;  %1247 = vmatpush.msrb.mxu2 %v1551_v33  ;;  %v1577_v33 = vld [vmem:[%s2514_s4 + $0x298] sm:$0xff] }
 0x4ff   :  { %v1056_v18 = vadd.f32 %v1622_v10, %v1055_v24 }
 0x500   :  { %v1071_v28 = vadd.f32 %v1624_v11, %v1070_v25  ;;  %1248 = vmatpush.msrb.mxu2 %v1549_v22  ;;  %v1546_v25 = vld [vmem:[%s2513_s3 + $0x130] sm:$0xff] }
 0x501   :  { %v1060_v29 = vsel %vm1059_vm6, %v1622_v10, %v1056_v18  ;;  %v1544_v18 = vld [vmem:[%s2513_s3 + $0x120] sm:$0xff]  ;;  %v1560_v22 = vld [vmem:[%s2514_s4 + $0x210] sm:$0xff] }
 0x502   :  { %v1065_v32 = vsel %vm1062_vm8, %v1064_v0, %v1060_v29  ;;  %v1075_v34 = vsel %vm1074_vm9, %v1624_v11, %v1071_v28  ;;  %v1042_v11 = vmul.f32 0.5, %v2269_v3  ;;  %v1550_v3 = vld [vmem:[%s2513_s3 + $0x150] sm:$0xff]  ;;  %1249 = vmatpush.msrb.mxu2 %v1547_v26  ;;  %v1545_v0 = vld [vmem:[%s2513_s3 + $0x128] sm:$0xff]  ;;  %v1543_v29 = vld [vmem:[%s2513_s3 + $0x118] sm:$0xff] }
 0x503   :  { %v1082_v35 = vmul.f32 1.0614054, %v1065_v32  ;;  %v1080_v36 = vsel %vm1077_vm10, %v1079_v30, %v1075_v34  ;;  %1227 = vmatpush.msra.mxu1 %v1550_v3  ;;  %v1542_v28 = vld [vmem:[%s2513_s3 + $0x110] sm:$0xff]  ;;  %v1540_v30 = vld [vmem:[%s2513_s3 + $0x100] sm:$0xff]  ;;  %v1561_v3 = vld [vmem:[%s2514_s4 + $0x218] sm:$0xff] }
 0x504   :  { %v1083_v37 = vmul.f32 1.0614054, %v1080_v36  ;;  %1250 = vmatpush.msrb.mxu2 %v1545_v0  ;;  %v1575_v0 = vld [vmem:[%s2514_s4 + $0x288] sm:$0xff] }
 0x505   :  { %v1084_v39 = vadd.f32 -1.4531521, %v1082_v35  ;;  %1228 = vmatpush.msra.mxu1 %v1548_v8 }
 0x506   :  { %v1085_v7 = vadd.f32 -1.4531521, %v1083_v37  ;;  %1251 = vmatpush.msrb.mxu2 %v1543_v29  ;;  %v454_v37 = vperm.slane %v2341_v6, 0  ;;  %v1283_v29 = vperm.slane %v2341_v6, 1 }
 0x507   :  { %v1086_v21 = vmul.f32 %v1084_v39, %v1065_v32  ;;  %1229 = vmatpush.msra.mxu1 %v1546_v25  ;;  %v1576_v25 = vld [vmem:[%s2514_s4 + $0x290] sm:$0xff] }
 0x508   :  { %v1087_v42 = vmul.f32 %v1085_v7, %v1080_v36  ;;  %1252 = vmatpush.msrb.mxu2 %v1541_v40  ;;  %v673_v39 = vadd.f32 %v2143_v14, %v454_v37 }
 0x509   :  { %v1088_v45 = vadd.f32 1.4214138, %v1086_v21  ;;  %1230 = vmatpush.msra.mxu1 %v1544_v18  ;;  %v1559_v18 = vld [vmem:[%s2514_s4 + $0x208] sm:$0xff] }
 0x50a   :  { %v1089_v44 = vadd.f32 1.4214138, %v1087_v42  ;;  %v693_v46 = vadd.f32 %v2145_v54, %v673_v39  ;;  %1424 = vmatpush.msra.mxu2 %v1589_v51 }
 0x50b   :  { %v1090_v49 = vmul.f32 %v1088_v45, %v1065_v32  ;;  %1231 = vmatpush.msra.mxu1 %v1542_v28 }
 0x50c   :  { %v1091_v43 = vmul.f32 %v1089_v44, %v1080_v36 }
 0x50d   :  { %v1092_v56 = vadd.f32 -0.28449672, %v1090_v49  ;;  %1232 = vmatpush.msra.mxu1 %v1540_v30  ;;  %v2448_v30 = vld [vmem:[#allocation2 + $0x620] sm:$0xff] }
 0x50e   :  { %v1093_v57 = vadd.f32 -0.28449672, %v1091_v43  ;;  %v1572_v43 = vld [vmem:[%s2514_s4 + $0x270] sm:$0xff]  ;;  %v1282_v40 = vperm.slane %v2448_v30, 1 }
 0x50f   :  { %v1094_v27 = vmul.f32 %v1092_v56, %v1065_v32  ;;  %v1588_v56 = vld [vmem:[%s2514_s4 + $0x2f0] sm:$0xff] }
 0x510   :  { %v1095_v58 = vmul.f32 %v1093_v57, %v1080_v36  ;;  %v1571_v57 = vld [vmem:[%s2514_s4 + $0x268] sm:$0xff]  ;;  %1425 = vmatpush.msra.mxu2 %v1588_v56 }
 0x511   :  { %v1096_v61 = vadd.f32 0.2548296, %v1094_v27  ;;  %v1587_v27 = vld [vmem:[%s2514_s4 + $0x2e8] sm:$0xff] }
 0x512   :  { %v1097_v41 = vadd.f32 0.2548296, %v1095_v58  ;;  %v1570_v58 = vld [vmem:[%s2514_s4 + $0x260] sm:$0xff]  ;;  %1426 = vmatpush.msra.mxu2 %v1587_v27 }
 0x513   :  { %v1098_v63 = vmul.f32 %v1096_v61, %v1065_v32  ;;  %v1586_v61 = vld [vmem:[%s2514_s4 + $0x2e0] sm:$0xff] }
 0x514   :  { %v1099_v2 = vmul.f32 %v1097_v41, %v1080_v36  ;;  %v1569_v41 = vld [vmem:[%s2514_s4 + $0x258] sm:$0xff]  ;;  %1427 = vmatpush.msra.mxu2 %v1586_v61 }
 0x515   :  { %v1108_v47 = vmul.f32 %v1626_v1, %v1098_v63  ;;  %v1585_v63 = vld [vmem:[%s2514_s4 + $0x2d8] sm:$0xff] }
 0x516   :  { %v1109_v4 = vmul.f32 %v1628_v60, %v1099_v2  ;;  %v1568_v60 = vld [vmem:[%s2514_s4 + $0x250] sm:$0xff]  ;;  %1428 = vmatpush.msra.mxu2 %v1585_v63 }
 0x517   :  { %v1110_v9 = vsub.f32 1.0, %v1108_v47  ;;  %v1584_v47 = vld [vmem:[%s2514_s4 + $0x2d0] sm:$0xff] }
 0x518   :  { %v1111_v31 = vsub.f32 1.0, %v1109_v4  ;;  %1429 = vmatpush.msra.mxu2 %v1584_v47 }
 0x519   :  { %v1114_v50 = vsub.f32 0.0, %v1110_v9 }
 0x51a   :  { %v1115_v53 = vsub.f32 0.0, %v1111_v31 }
 0x51b   :  { %v1116_v10 = vsel %vm1112_vm11, %v1110_v9, %v1114_v50  ;;  %v1567_v9 = vld [vmem:[%s2514_s4 + $0x248] sm:$0xff]  ;;  %v1582_v50 = vld [vmem:[%s2514_s4 + $0x2c0] sm:$0xff]  ;;  %vm1477_vm11 = vcmask 130048  }
 0x51c   :  { %v1118_v12 = vadd.f32 1.0, %v1116_v10  ;;  %v1117_v13 = vsel %vm1113_vm12, %v1111_v31, %v1115_v53  ;;  %v1583_v31 = vld [vmem:[%s2514_s4 + $0x2c8] sm:$0xff]  ;;  %v1565_v53 = vld [vmem:[%s2514_s4 + $0x238] sm:$0xff] }
 0x51d   :  { %v1119_v16 = vadd.f32 1.0, %v1117_v13  ;;  %1430 = vmatpush.msra.mxu2 %v1583_v31  ;;  %v1581_v10 = vld [vmem:[%s2514_s4 + $0x2b8] sm:$0xff]  ;;  %v1451_v31 = vld [vmem:[%s2511_s1 + $0x150] sm:$0xff] }
 0x51e   :  { %v1120_v17 = vmul.f32 %v1118_v12, %v1042_v11  ;;  %v1564_v11 = vld [vmem:[%s2514_s4 + $0x230] sm:$0xff] }
 0x51f   :  { %v1121_v24 = vmul.f32 %v1119_v16, %v1043_v15  ;;  %1431 = vmatpush.msra.mxu2 %v1582_v50  ;;  %v1580_v12 = vld [vmem:[%s2514_s4 + $0x2b0] sm:$0xff]  ;;  %v1563_v15 = vld [vmem:[%s2514_s4 + $0x228] sm:$0xff] }
 0x520   :  { %1172 = vmatmul.f32.vlgmr.msrb.gmra.mxu3 %v1120_v17  ;;  %v1579_v16 = vld [vmem:[%s2514_s4 + $0x2a8] sm:$0xff] }
 0x521   :  { %1192 = vmatmul.f32.vlgmr.msrb.gmra.mxu0 %v1121_v24  ;;  %1432 = vmatpush.msra.mxu2 %v1581_v10  ;;  %v1562_v24 = vld [vmem:[%s2514_s4 + $0x220] sm:$0xff] }
 0x523   :  { %1433 = vmatpush.msra.mxu2 %v1580_v12 }
 0x525   :  { %1434 = vmatpush.msra.mxu2 %v1579_v16 }
 0x527   :  { %1435 = vmatpush.msra.mxu2 %v1578_v20 }
 0x529   :  { %1436 = vmatpush.msra.mxu2 %v1577_v33 }
 0x52b   :  { %1437 = vmatpush.msra.mxu2 %v1576_v25 }
 0x52d   :  { %1438 = vmatpush.msra.mxu2 %v1575_v0 }
 0x59e   :  { %v1193_v34 = vpop.f32.mrf.mxu0 }
 0x5a3   :  { %v1173_v32 = vpop.f32.mrf.mxu3 }
 0x5a4   :  { %v1174_v55 = vadd.f32 %v1173_v32, %v1155_v19  ;;  %v1558_v19 = vld [vmem:[%s2514_s4 + $0x200] sm:$0xff] }
 0x5a5   :  { %v1574_v32 = vld [vmem:[%s2514_s4 + $0x280] sm:$0xff] }
 0x5a6   :  { %v1194_v35 = vadd.f32 %v1193_v34, %v1174_v55  ;;  %v1287_v34 = vperm.slane %v2341_v6, 2  ;;  %1439 = vmatpush.msra.mxu2 %v1574_v32 }
 0x5a8   :  { %v2335_v36 = vadd.f32 %v1194_v35, %v2149_v62  ;;  %v1286_v35 = vperm.slane %v2448_v30, 2 }
 0x5aa   :  { %1556 = vmatmul.msk.f32.vlgmr.msra.gmra.mxu1 %vm711_vm0, %v2335_v36  ;;  %1557 = vmatmul.msk.f32.vlgmr.msrb.gmra.mxu2 %vm711_vm0, %v2335_v36 }
 0x627   :  { %v1234_v38 = vpop.f32.mrf.mxu1 }
 0x628   :  { %v1235_v21 = vadd.f32 %v1234_v38, %v1951_v59  ;;  %v1573_v59 = vld [vmem:[%s2514_s4 + $0x278] sm:$0xff] }
 0x629   :  { %1404 = vmatpush.msrb.mxu1 %v1573_v59 }
 0x62b   :  { %1405 = vmatpush.msrb.mxu1 %v1572_v43 }
 0x62d   :  { %v1254_v7 = vpop.f32.mrf.mxu2  ;;  %1406 = vmatpush.msrb.mxu1 %v1571_v57 }
 0x62e   :  { %v1255_v62 = vadd.f32 %v1254_v7, %v693_v46 }
 0x62f   :  { %1407 = vmatpush.msrb.mxu1 %v1570_v58 }
 0x630   :  { %v1257_v23 = vadd.f32 %v1255_v62, %v1235_v21 }
 0x631   :  { %1408 = vmatpush.msrb.mxu1 %v1569_v41 }
 0x632   :  { %1258 = vadd.xlane.f32.xlu2 %v1257_v23 }
 0x633   :  { %1409 = vmatpush.msrb.mxu1 %v1568_v60 }
 0x635   :  { %1410 = vmatpush.msrb.mxu1 %v1567_v9  ;;  %v1452_v9 = vld [vmem:[%s2511_s1 + $0x168] sm:$0xff] }
 0x636   :  { %1465 = vmatpush.msra.mxu3 %v1452_v9 }
 0x638   :  { %1466 = vmatpush.msra.mxu3 %v1451_v31 }
 0x6a5   :  { %v1259_v42 = vpop.xlane.xlu2 %1258 }
 0x6a6   :  { %v1260_v45 = vmul.f32 %v1259_v42, %v1959_v52 }
 0x6a8   :  { %v2348_v48 = vsub.f32 %v1235_v21, %v1260_v45  ;;  %v2350_v44 = vsub.f32 %v1255_v62, %v1260_v45 }
 0x6aa   :  { %v1263_v49 = vmul.f32 %v2348_v48, %v2348_v48  ;;  %v1264_v14 = vmul.f32 %v2350_v44, %v2350_v44 }
 0x6ac   :  { %v1265_v54 = vadd.f32 %v1264_v14, %v1263_v49 }
 0x6ae   :  { %1266 = vadd.xlane.f32.xlu2 %v1265_v54 }
 0x721   :  { %v1267_v1 = vpop.xlane.xlu2 %1266 }
 0x722   :  { %v1268_v2 = vmul.f32 %v1267_v1, %v1959_v52  ;;  %v1566_v52 = vld [vmem:[%s2514_s4 + $0x240] sm:$0xff] }
 0x723   :  { %1411 = vmatpush.msrb.mxu1 %v1566_v52 }
 0x724   :  { %v1269_v4 = vadd.f32 1e-05, %v1268_v2 }
 0x725   :  { %1412 = vmatpush.msrb.mxu1 %v1565_v53 }
 0x726   :  { %1629 = vrsqrt.f32 %v1269_v4  ;;  %vm1276_vm14 = vweird.f32 %v1269_v4 }
 0x727   :  { %1413 = vmatpush.msrb.mxu1 %v1564_v11 }
 0x729   :  { %1414 = vmatpush.msrb.mxu1 %v1563_v15 }
 0x72b   :  { %1415 = vmatpush.msrb.mxu1 %v1562_v24 }
 0x72c   :  { %v1630_v13 = vpop.eup %1629 }
 0x72d   :  { %v1271_v17 = vmul.f32 %v1630_v13, %v1269_v4  ;;  %vm1277_vm13 = vweird.f32 %v1630_v13  ;;  %1416 = vmatpush.msrb.mxu1 %v1561_v3 }
 0x72e   :  { %vm1278_vm15 = vmor %vm1276_vm14, %vm1277_vm13 }
 0x72f   :  { %v1272_v5 = vmul.f32 %v1630_v13, %v1271_v17  ;;  %1417 = vmatpush.msrb.mxu1 %v1560_v22 }
 0x731   :  { %v1273_v8 = vmul.f32 0.5, %v1272_v5  ;;  %1418 = vmatpush.msrb.mxu1 %v1559_v18 }
 0x733   :  { %v1274_v26 = vsub.f32 1.5, %v1273_v8  ;;  %1419 = vmatpush.msrb.mxu1 %v1558_v19 }
 0x735   :  { %v1275_v28 = vmul.f32 %v1630_v13, %v1274_v26 }
 0x737   :  { %v1279_v55 = vsel %vm1278_vm15, %v1630_v13, %v1275_v28 }
 0x738   :  { %v1280_v37 = vmul.f32 %v1279_v55, %v2348_v48  ;;  %v1281_v39 = vmul.f32 %v1279_v55, %v2350_v44 }
 0x73a   :  { %v1284_v38 = vmul.f32 %v1282_v40, %v1280_v37  ;;  %v1285_v46 = vmul.f32 %v1283_v29, %v1281_v39 }
 0x73c   :  { %v2461_v7 = vadd.f32 %v1286_v35, %v1284_v38  ;;  %v2463_v21 = vadd.f32 %v1287_v34, %v1285_v46 }
 0x73e   :  { %v2466_v62 = vmul.f32 0.70710677, %v2461_v7  ;;  %v2469_v23 = vmul.f32 0.70710677, %v2463_v21 }
 0x740   :  { %v1294_v6 = vand.u32 2147483647, %v2466_v62  ;;  %v1295_v42 = vand.u32 2147483647, %v2469_v23  ;;  %vm1360_vm9 = vcmp.ge.f32.partialorder %v2466_v62, 0.0  ;;  %vm1361_vm10 = vcmp.ge.f32.partialorder %v2469_v23, 0.0 }
 0x741   :  { %v1449_v62 = vld [vmem:[%s2511_s1 + $0x120] sm:$0xff]  ;;  %v1446_v23 = vld [vmem:[%s2511_s1 + $0xd8] sm:$0xff] }
 0x742   :  { %v1296_v45 = vmul.f32 0.3275911, %v1294_v6  ;;  %v1297_v48 = vmul.f32 0.3275911, %v1295_v42  ;;  %v1348_v50 = vsub.f32 0.0, %v1294_v6  ;;  %v1349_v12 = vsub.f32 0.0, %v1295_v42 }
 0x744   :  { %v1298_v44 = vadd.f32 1.0, %v1296_v45  ;;  %v1299_v49 = vadd.f32 1.0, %v1297_v48  ;;  %v1350_v16 = vmul.f32 %v1348_v50, %v1294_v6  ;;  %v1351_v20 = vmul.f32 %v1349_v12, %v1295_v42 }
 0x745   :  { %v1290_v48 = vmul.f32 0.5, %v2461_v7  ;;  %v1448_v7 = vld [vmem:[%s2511_s1 + $0x108] sm:$0xff] }
 0x746   :  { %1631 = vrcp.f32 %v1298_v44  ;;  %v1311_v56 = vand.u32 2147483648, %v1298_v44  ;;  %v1309_v58 = vand.u32 2147483647, %v1298_v44  ;;  %v1326_v61 = vand.u32 2147483648, %v1299_v49 }
 0x747   :  { %1633 = vrcp.f32 %v1299_v49  ;;  %v1324_v63 = vand.u32 2147483647, %v1299_v49  ;;  %vm1305_vm3 = vweird.f32 %v1298_v44  ;;  %vm1320_vm5 = vweird.f32 %v1299_v49 }
 0x748   :  { %v1312_v2 = vor.u32 1.1754944e-38, %v1311_v56  ;;  %vm1310_vm6 = vcmp.eq.f32.partialorder %v1309_v58, 8.507059e+37  ;;  %v1327_v4 = vor.u32 1.1754944e-38, %v1326_v61  ;;  %v1352_v33 = vmul.f32 1.442695, %v1350_v16  ;;  %v1445_v56 = vld [vmem:[%s2511_s1 + $0xc0] sm:$0xff] }
 0x749   :  { %vm1325_vm8 = vcmp.eq.f32.partialorder %v1324_v63, 8.507059e+37  ;;  %v1354_v25 = vmul.f32 1.442695, %v1351_v20 }
 0x74a   :  { %1635 = vpow2.f32 %v1352_v33 }
 0x74b   :  { %1637 = vpow2.f32 %v1354_v25 }
 0x74c   :  { %v1632_v14 = vpop.eup %1631 }
 0x74d   :  { %v1634_v54 = vpop.eup %1633  ;;  %v1301_v59 = vmul.f32 %v1632_v14, %v1298_v44  ;;  %vm1306_vm1 = vweird.f32 %v1632_v14 }
 0x74e   :  { %v1316_v51 = vmul.f32 %v1634_v54, %v1299_v49  ;;  %vm1321_vm2 = vweird.f32 %v1634_v54  ;;  %vm1307_vm4 = vmor %vm1305_vm3, %vm1306_vm1 }
 0x74f   :  { %v1302_v43 = vsub.f32 1.0, %v1301_v59  ;;  %vm1322_vm7 = vmor %vm1320_vm5, %vm1321_vm2 }
 0x750   :  { %v1317_v57 = vsub.f32 1.0, %v1316_v51  ;;  %v1636_v55 = vpop.eup %1635 }
 0x751   :  { %v1303_v27 = vmul.f32 %v1632_v14, %v1302_v43  ;;  %v1638_v35 = vpop.eup %1637  ;;  %v1450_v43 = vld [vmem:[%s2511_s1 + $0x138] sm:$0xff] }
 0x752   :  { %v1318_v41 = vmul.f32 %v1634_v54, %v1317_v57  ;;  %1467 = vmatpush.msra.mxu3 %v1450_v43  ;;  %v1403_v57 = vperm.slane %v2448_v30, 3 }
 0x753   :  { %v1304_v1 = vadd.f32 %v1632_v14, %v1303_v27 }
 0x754   :  { %v1319_v60 = vadd.f32 %v1634_v54, %v1318_v41  ;;  %1468 = vmatpush.msra.mxu3 %v1449_v62 }
 0x755   :  { %v1308_v47 = vsel %vm1307_vm4, %v1632_v14, %v1304_v1  ;;  %v1291_v14 = vmul.f32 0.5, %v2463_v21  ;;  %v1447_v21 = vld [vmem:[%s2511_s1 + $0xf0] sm:$0xff]  ;;  %v1453_v1 = vld [vmem:[%s2511_s1 + $0x180] ss:$0 sm:$0xff] }
 0x756   :  { %v1313_v52 = vsel %vm1310_vm6, %v1312_v2, %v1308_v47  ;;  %v1323_v53 = vsel %vm1322_vm7, %v1634_v54, %v1319_v60  ;;  %1469 = vmatpush.msra.mxu3 %v1448_v7 }
 0x757   :  { %v1330_v10 = vmul.f32 1.0614054, %v1313_v52  ;;  %v1328_v11 = vsel %vm1325_vm8, %v1327_v4, %v1323_v53 }
 0x758   :  { %v1331_v13 = vmul.f32 1.0614054, %v1328_v11  ;;  %1470 = vmatpush.msra.mxu3 %v1447_v21 }
 0x759   :  { %v1332_v15 = vadd.f32 -1.4531521, %v1330_v10 }
 0x75a   :  { %v1333_v17 = vadd.f32 -1.4531521, %v1331_v13  ;;  %1471 = vmatpush.msra.mxu3 %v1446_v23 }
 0x75b   :  { %v1334_v24 = vmul.f32 %v1332_v15, %v1313_v52 }
 0x75c   :  { %v1335_v5 = vmul.f32 %v1333_v17, %v1328_v11  ;;  %1472 = vmatpush.msra.mxu3 %v1445_v56 }
 0x75d   :  { %v1336_v3 = vadd.f32 1.4214138, %v1334_v24 }
 0x75e   :  { %v1337_v8 = vadd.f32 1.4214138, %v1335_v5 }
 0x75f   :  { %v1338_v22 = vmul.f32 %v1336_v3, %v1313_v52 }
 0x760   :  { %v1339_v26 = vmul.f32 %v1337_v8, %v1328_v11 }
 0x761   :  { %v1340_v18 = vadd.f32 -0.28449672, %v1338_v22 }
 0x762   :  { %v1341_v0 = vadd.f32 -0.28449672, %v1339_v26 }
 0x763   :  { %v1342_v28 = vmul.f32 %v1340_v18, %v1313_v52 }
 0x764   :  { %v1343_v29 = vmul.f32 %v1341_v0, %v1328_v11 }
 0x765   :  { %v1344_v40 = vadd.f32 0.2548296, %v1342_v28 }
 0x766   :  { %v1345_v19 = vadd.f32 0.2548296, %v1343_v29 }
 0x767   :  { %v1346_v32 = vmul.f32 %v1344_v40, %v1313_v52 }
 0x768   :  { %v1347_v34 = vmul.f32 %v1345_v19, %v1328_v11 }
 0x769   :  { %v1356_v37 = vmul.f32 %v1636_v55, %v1346_v32 }
 0x76a   :  { %v1357_v39 = vmul.f32 %v1638_v35, %v1347_v34 }
 0x76b   :  { %v1358_v38 = vsub.f32 1.0, %v1356_v37 }
 0x76c   :  { %v1359_v46 = vsub.f32 1.0, %v1357_v39 }
 0x76d   :  { %v1362_v6 = vsub.f32 0.0, %v1358_v38 }
 0x76e   :  { %v1363_v42 = vsub.f32 0.0, %v1359_v46 }
 0x76f   :  { %v1364_v45 = vsel %vm1360_vm9, %v1358_v38, %v1362_v6 }
 0x770   :  { %v1366_v44 = vadd.f32 1.0, %v1364_v45  ;;  %v1365_v49 = vsel %vm1361_vm10, %v1359_v46, %v1363_v42 }
 0x771   :  { %v1367_v54 = vadd.f32 1.0, %v1365_v49 }
 0x772   :  { %v1368_v59 = vmul.f32 %v1366_v44, %v1290_v48 }
 0x773   :  { %v1369_v51 = vmul.f32 %v1367_v54, %v1291_v14 }
 0x774   :  { %1420 = vmatmul.f32.vlgmr.msrb.gmra.mxu1 %v1368_v59 }
 0x775   :  { %1440 = vmatmul.f32.vlgmr.msra.gmra.mxu2 %v1369_v51 }
 0x7f1   :  { %v1421_v27 = vpop.f32.mrf.mxu1 }
 0x7f2   :  { %v1422_v58 = vadd.f32 %v1421_v27, %v1403_v57 }
 0x7f8   :  { %v1441_v61 = vpop.f32.mrf.mxu2 }
 0x7f9   :  { %v1442_v41 = vadd.f32 %v1441_v61, %v1422_v58 }
 0x7fb   :  { %v1444_v63 = vadd.f32 %v1442_v41, %v2335_v36 }
 0x7fd   :  { %1590 = vmatmul.msk.f32.vlgmr.msra.gmra.mxu3 %vm711_vm0, %v1444_v63 }
 0x880   :  { %v1474_v2 = vpop.f32.mrf.mxu3 }
 0x881   :  { %v1475_v60 = vadd.f32 %v1474_v2, %v1453_v1 }
 0x883   :  { %1478 = vst.msk [vmem:[%s2515_s5] sm:$0xff] %vm1477_vm11, %v1475_v60 }
 0x884   :  { %1483 = vsyncpa [#allocation3], 1 }

</bundles_post_ra>
